<compile_context>
chip_gen: v7x
topology: tpu7x:2x2x1
jax: 0.10.0
libtpu: 0.0.40
codegen_flags: <defaults>
</compile_context>

<pallas_src>
import functools

import numpy as np
import jax
import jax.numpy as jnp
from jax.experimental import pallas as pl
from jax.experimental.pallas import tpu as pltpu


# -----------------------------------------------------------------------------
# In-kernel helpers
# -----------------------------------------------------------------------------
def _layer_norm(y, gamma, beta, eps):
    mu = jnp.mean(y, axis=-1, keepdims=True)
    var = jnp.mean((y - mu) ** 2, axis=-1, keepdims=True)
    return (y - mu) * jax.lax.rsqrt(var + eps) * gamma + beta


def _attention(q, k, v, bias, wo, bo, *, n_heads, d_k, d_v):
    """Head-batched scaled-dot-product attention + single fused output projection.

    q: (Tq, H*d_k) f32   k: (Sk, H*d_k) f32   v: (Sk, H*d_v) f32
    bias: (Tq, Sk) bf16 additive mask bias (-1e9 where masked)
    wo: (H*d_v, D) bf16  bo: (D,) f32
    1/sqrt(d_k) is already folded into the Q projection weights.
    Returns (output (Tq, D) f32, attn probs (H, Tq, Sk) f32).
    """
    # TODO(synk): replace the per-head lane slices with one grouping relayout
    # (einshape 'q(hd)->hqd') once grouped relayouts lower reliably; slices+stack are
    # kept here because they are known-good under Mosaic at sub-128 head widths.
    qh = jnp.stack([q[:, h * d_k:(h + 1) * d_k] for h in range(n_heads)], 0).astype(jnp.bfloat16)
    kh = jnp.stack([k[:, h * d_k:(h + 1) * d_k] for h in range(n_heads)], 0).astype(jnp.bfloat16)
    vh = jnp.stack([v[:, h * d_v:(h + 1) * d_v] for h in range(n_heads)], 0).astype(jnp.bfloat16)

    # (H, Tq, Sk) scores for all heads in one bf16 MXU call, f32 accumulation.
    s = jnp.einsum('hqd,hkd->hqk', qh, kh, preferred_element_type=jnp.float32)
    s = s + bias[None].astype(jnp.float32)            # additive mask: one VPU add
    s = s - jnp.max(s, axis=-1, keepdims=True)
    e = jnp.exp(s)
    # approx reciprocal -> EUP slot (essentially free); fine under the bf16 parity gate.
    attn = e * pl.reciprocal(jnp.sum(e, axis=-1, keepdims=True), approx=True)
    p = attn.astype(jnp.bfloat16)

    # (H, Tq, d_v) context, then re-pack heads into lanes and run ONE output projection
    # with contraction K = H*d_v (instead of H matmuls with K = d_v plus a head sum).
    ctx = jnp.einsum('hqk,hkd->hqd', p, vh, preferred_element_type=jnp.float32)
    ctx2 = jnp.concatenate([ctx[h] for h in range(n_heads)], axis=-1)      # (Tq, H*d_v)
    o = jnp.dot(ctx2.astype(jnp.bfloat16), wo, preferred_element_type=jnp.float32) + bo
    return o, attn


# -----------------------------------------------------------------------------
# Fused DecoderLayer kernel (one (batch, query-tile) block per grid step)
# -----------------------------------------------------------------------------
def decoder_layer_kernel(n_heads, d_k, d_v, eps,
                         xq_ref, xf_ref, enc_ref, sbias_ref, ebias_ref,
                         # self-attention params
                         wq1_ref, bq1_ref, wkv1_ref, bkv1_ref, wo1_ref, bo1_ref,
                         g1_ref, be1_ref,
                         # enc-dec attention params
                         wq2_ref, bq2_ref, wkv2_ref, bkv2_ref, wo2_ref, bo2_ref,
                         g2_ref, be2_ref,
                         # FFN params (Conv1d k=1 == per-position linear)
                         w1_ref, b1_ref, w2_ref, b2_ref, g3_ref, be3_ref,
                         # outputs
                         out_ref, sattn_ref, eattn_ref):
    nqk = n_heads * d_k

    xq = xq_ref[...]                                   # (Tq, D) query rows / residual
    xq_b = xq.astype(jnp.bfloat16)
    xf_b = xf_ref[...].astype(jnp.bfloat16)            # (Sq, D) full decoder stream (K/V)
    enc_b = enc_ref[...].astype(jnp.bfloat16)          # (Sk, D) encoder outputs (K/V)

    # ---- 1) masked decoder self-attention ----
    q1 = jnp.dot(xq_b, wq1_ref[...], preferred_element_type=jnp.float32) + bq1_ref[0]
    kv1 = jnp.dot(xf_b, wkv1_ref[...], preferred_element_type=jnp.float32) + bkv1_ref[0]
    o1, sattn = _attention(q1, kv1[:, :nqk], kv1[:, nqk:], sbias_ref[...],
                           wo1_ref[...], bo1_ref[0], n_heads=n_heads, d_k=d_k, d_v=d_v)
    y1 = _layer_norm(o1 + xq, g1_ref[0], be1_ref[0], eps)
    sattn_ref[...] = sattn.astype(sattn_ref.dtype)     # bf16 store: halves prob writeback

    # ---- 2) encoder-decoder attention ----
    q2 = jnp.dot(y1.astype(jnp.bfloat16), wq2_ref[...],
                 preferred_element_type=jnp.float32) + bq2_ref[0]
    kv2 = jnp.dot(enc_b, wkv2_ref[...], preferred_element_type=jnp.float32) + bkv2_ref[0]
    o2, eattn = _attention(q2, kv2[:, :nqk], kv2[:, nqk:], ebias_ref[...],
                           wo2_ref[...], bo2_ref[0], n_heads=n_heads, d_k=d_k, d_v=d_v)
    y2 = _layer_norm(o2 + y1, g2_ref[0], be2_ref[0], eps)
    eattn_ref[...] = eattn.astype(eattn_ref.dtype)

    # ---- 3) position-wise FFN ----
    # TODO(synk): K-tile w1/w2 over a reduction grid axis at production d_model/d_ff
    # (see header note) instead of whole-weight blocks.
    h = jnp.maximum(
        jnp.dot(y2.astype(jnp.bfloat16), w1_ref[...],
                preferred_element_type=jnp.float32) + b1_ref[0], 0.0)
    y3 = jnp.dot(h.astype(jnp.bfloat16), w2_ref[...],
                 preferred_element_type=jnp.float32) + b2_ref[0]
    out_ref[...] = _layer_norm(y3 + y2, g3_ref[0], be3_ref[0], eps)


# -----------------------------------------------------------------------------
# Wrapper: host-side weight packing + pallas_call
# -----------------------------------------------------------------------------
def decoder_layer(dec_inputs, enc_outputs, dec_self_mask, dec_enc_mask, params,
                  *, n_heads, d_k, d_v, probs_dtype=jnp.bfloat16, q_tile=128):
    B, Sq, D = dec_inputs.shape
    Sk = enc_outputs.shape[1]
    tq = q_tile if (q_tile < Sq and Sq % q_tile == 0) else Sq
    n_qt = Sq // tq
    scale = jnp.float32(1.0 / np.sqrt(d_k))
    bf16 = jnp.bfloat16

    wq1, bq1, wk1, bk1, wv1, bv1, wo1, bo1, g1, be1 = params["self_attn"]
    wq2, bq2, wk2, bk2, wv2, bv2, wo2, bo2, g2, be2 = params["enc_attn"]
    w1, b1, w2, b2, g3, be3 = params["ffn"]

    # Host-side packing (cheap XLA ops, outside the kernel):
    #  * fold 1/sqrt(d_k) into W_Q / b_Q,
    #  * fuse the K|V projections of each attention block,
    #  * cast every MXU weight operand to bf16 (f32 accumulation inside the kernel).
    wq1s = (wq1 * scale).astype(bf16); bq1s = bq1 * scale
    wkv1 = jnp.concatenate([wk1, wv1], axis=1).astype(bf16)
    bkv1 = jnp.concatenate([bk1, bv1], axis=1)
    wq2s = (wq2 * scale).astype(bf16); bq2s = bq2 * scale
    wkv2 = jnp.concatenate([wk2, wv2], axis=1).astype(bf16)
    bkv2 = jnp.concatenate([bk2, bv2], axis=1)
    wo1b, wo2b = wo1.astype(bf16), wo2.astype(bf16)
    w1b, w2b = w1.astype(bf16), w2.astype(bf16)

    # Masks -> bf16 additive bias (-1e9 where masked).  Accepts a shared (Sq, Sk) mask
    # (constant index_map, DMA'd once -- no host broadcast over B) or per-batch
    # (B, Sq, Sk) masks (e.g. padding masks).
    def to_bias(mask):
        return (mask.astype(jnp.float32) * jnp.float32(-1e9)).astype(bf16)

    def mask_spec(bias, cols):
        if bias.ndim == 2:
            return pl.BlockSpec((tq, cols), lambda b, qt: (qt, 0))
        return pl.BlockSpec((None, tq, cols), lambda b, qt: (b, qt, 0))

    sbias = to_bias(dec_self_mask)
    ebias = to_bias(dec_enc_mask)

    def full(a):   # whole-array block with a constant index -> DMA'd once
        # TODO(synk): on v7x mark these with pipeline_mode=pl.Buffered(1) to drop the
        # redundant second weight buffer (kept at the default here for compatibility).
        idx = (0,) * a.ndim
        return pl.BlockSpec(a.shape, lambda b, qt, _idx=idx: _idx)

    kernel = functools.partial(decoder_layer_kernel, n_heads, d_k, d_v, 1e-5)

    in_specs = [
        pl.BlockSpec((None, tq, D), lambda b, qt: (b, qt, 0)),    # query-row tile
        pl.BlockSpec((None, Sq, D), lambda b, qt: (b, 0, 0)),     # full dec stream (K/V)
        pl.BlockSpec((None, Sk, D), lambda b, qt: (b, 0, 0)),     # encoder outputs (K/V)
        mask_spec(sbias, Sq),
        mask_spec(ebias, Sk),
        full(wq1s), full(bq1s), full(wkv1), full(bkv1), full(wo1b), full(bo1),
        full(g1), full(be1),
        full(wq2s), full(bq2s), full(wkv2), full(bkv2), full(wo2b), full(bo2),
        full(g2), full(be2),
        full(w1b), full(b1), full(w2b), full(b2), full(g3), full(be3),
    ]
    out_specs = [
        pl.BlockSpec((None, tq, D), lambda b, qt: (b, qt, 0)),
        pl.BlockSpec((None, n_heads, tq, Sq), lambda b, qt: (b, 0, qt, 0)),
        pl.BlockSpec((None, n_heads, tq, Sk), lambda b, qt: (b, 0, qt, 0)),
    ]
    out_shape = [
        jax.ShapeDtypeStruct((B, Sq, D), jnp.float32),
        jax.ShapeDtypeStruct((B, n_heads, Sq, Sq), probs_dtype),
        jax.ShapeDtypeStruct((B, n_heads, Sq, Sk), probs_dtype),
    ]

    return pl.pallas_call(
        kernel,
        grid=(B, n_qt),
        in_specs=in_specs,
        out_specs=out_specs,
        out_shape=out_shape,
        # Both grid axes are stateless -> "parallel": v7x can shard (batch x q-tiles)
        # across its two TensorCores even at B == 1 (neutral on v5e/v6e).
        compiler_params=pltpu.CompilerParams(
            dimension_semantics=("parallel", "parallel")),
    )(dec_inputs, dec_inputs, enc_outputs, sbias, ebias,
      wq1s, bq1s, wkv1, bkv1, wo1b, bo1, g1, be1,
      wq2s, bq2s, wkv2, bkv2, wo2b, bo2, g2, be2,
      w1b, b1, w2b, b2, g3, be3)


# -----------------------------------------------------------------------------
# Pure-JAX (f32) reference for correctness checking
# -----------------------------------------------------------------------------
def mha_ref(q_in, k_in, v_in, attn_mask, params, *, n_heads, d_k, d_v):
    wq, bq, wk, bk, wv, bv, wo, bo, gamma, beta = params
    B, Sq, _ = q_in.shape
    Sk = k_in.shape[1]
    if attn_mask.ndim == 2:
        attn_mask = attn_mask[None]
    q = (q_in @ wq + bq).reshape(B, Sq, n_heads, d_k).transpose(0, 2, 1, 3)
    k = (k_in @ wk + bk).reshape(B, Sk, n_heads, d_k).transpose(0, 2, 1, 3)
    v = (v_in @ wv + bv).reshape(B, Sk, n_heads, d_v).transpose(0, 2, 1, 3)
    scores = q @ jnp.swapaxes(k, -1, -2) / np.sqrt(d_k)
    scores = jnp.where(attn_mask[:, None] > 0.5, -1e9, scores)
    attn = jax.nn.softmax(scores, axis=-1)
    ctx = (attn @ v).transpose(0, 2, 1, 3).reshape(B, Sq, n_heads * d_v)
    o = ctx @ wo + bo + q_in
    mu = o.mean(-1, keepdims=True)
    var = ((o - mu) ** 2).mean(-1, keepdims=True)
    return (o - mu) / jnp.sqrt(var + 1e-5) * gamma + beta, attn


def ffn_ref(x, params):
    w1, b1, w2, b2, gamma, beta = params
    h = jnp.maximum(x @ w1 + b1, 0.0)
    y = h @ w2 + b2 + x
    mu = y.mean(-1, keepdims=True)
    var = ((y - mu) ** 2).mean(-1, keepdims=True)
    return (y - mu) / jnp.sqrt(var + 1e-5) * gamma + beta


def decoder_layer_ref(dec_inputs, enc_outputs, m_self, m_enc, params,
                      *, n_heads, d_k, d_v):
    o, sa = mha_ref(dec_inputs, dec_inputs, dec_inputs, m_self,
                    params["self_attn"], n_heads=n_heads, d_k=d_k, d_v=d_v)
    o, ea = mha_ref(o, enc_outputs, enc_outputs, m_enc,
                    params["enc_attn"], n_heads=n_heads, d_k=d_k, d_v=d_v)
    o = ffn_ref(o, params["ffn"])
    return o, sa, ea


# -----------------------------------------------------------------------------
# Deterministic parameter init
# -----------------------------------------------------------------------------
def init_linear(key, fan_in, fan_out):
    kw, kb = jax.random.split(key)
    w = jax.random.normal(kw, (fan_in, fan_out), jnp.float32) * 0.1
    b = jax.random.normal(kb, (1, fan_out), jnp.float32) * 0.01
    return w, b


def init_mha(key, d_model, d_k, d_v, n_heads):
    ks = jax.random.split(key, 4)
    wq, bq = init_linear(ks[0], d_model, d_k * n_heads)
    wk, bk = init_linear(ks[1], d_model, d_k * n_heads)
    wv, bv = init_linear(ks[2], d_model, d_v * n_heads)
    wo, bo = init_linear(ks[3], n_heads * d_v, d_model)
    gamma = jnp.ones((1, d_model), jnp.float32)
    beta = jnp.zeros((1, d_model), jnp.float32)
    return (wq, bq, wk, bk, wv, bv, wo, bo, gamma, beta)


def init_ffn(key, d_model, d_ff):
    k1, k2 = jax.random.split(key)
    w1, b1 = init_linear(k1, d_model, d_ff)   # conv1 (k=1) as (in, out)
    w2, b2 = init_linear(k2, d_ff, d_model)   # conv2 (k=1) as (in, out)
    gamma = jnp.ones((1, d_model), jnp.float32)
    beta = jnp.zeros((1, d_model), jnp.float32)
    return (w1, b1, w2, b2, gamma, beta)


if __name__ == "__main__":
    B, S_dec, S_enc = 2, 8, 8
    d_model, d_k, d_v, n_heads, d_ff = 32, 8, 8, 4, 64
    # (At production, pick d_model / H*d_k / d_ff as multiples of 128 -- 256 on
    #  v6e/v7x -- so every matmul fills the MXU; toy dims here only exercise the kernel.)

    key = jax.random.PRNGKey(0)
    k_in, k_enc, k_sa, k_ea, k_ffn = jax.random.split(key, 5)

    dec_inputs = jax.random.normal(k_in, (B, S_dec, d_model), jnp.float32)
    enc_outputs = jax.random.normal(k_enc, (B, S_enc, d_model), jnp.float32)

    # Shared causal mask (2-D: DMA'd once, no host broadcast over B) and a per-batch
    # encoder padding mask (3-D path).  1.0 == masked (torch masked_fill semantics).
    dec_self_attn_mask = jnp.triu(jnp.ones((S_dec, S_dec), jnp.float32), k=1)
    dec_enc_attn_mask = jnp.zeros((B, S_dec, S_enc), jnp.float32)
    dec_enc_attn_mask = dec_enc_attn_mask.at[1, :, S_enc - 2:].set(1.0)

    params = {
        "self_attn": init_mha(k_sa, d_model, d_k, d_v, n_heads),
        "enc_attn": init_mha(k_ea, d_model, d_k, d_v, n_heads),
        "ffn": init_ffn(k_ffn, d_model, d_ff),
    }

    out, self_attn, enc_attn = decoder_layer(
        dec_inputs, enc_outputs, dec_self_attn_mask, dec_enc_attn_mask, params,
        n_heads=n_heads, d_k=d_k, d_v=d_v)
    jax.block_until_ready((out, self_attn, enc_attn))

    out_r, sa_r, ea_r = decoder_layer_ref(
        dec_inputs, enc_outputs, dec_self_attn_mask, dec_enc_attn_mask, params,
        n_heads=n_heads, d_k=d_k, d_v=d_v)

    assert out.shape == (B, S_dec, d_model) and out.dtype == jnp.float32
    assert self_attn.shape == (B, n_heads, S_dec, S_dec)
    assert enc_attn.shape == (B, n_heads, S_dec, S_enc)
    # bf16 MXU operands + bf16 prob outputs -> parity gate loosened from 1e-4 (review).
    np.testing.assert_allclose(np.asarray(out), np.asarray(out_r),
                               rtol=2e-2, atol=3e-2)
    np.testing.assert_allclose(np.asarray(self_attn.astype(jnp.float32)),
                               np.asarray(sa_r), rtol=2e-2, atol=2e-2)
    np.testing.assert_allclose(np.asarray(enc_attn.astype(jnp.float32)),
                               np.asarray(ea_r), rtol=2e-2, atol=2e-2)

    print("KERNEL_OK")
</pallas_src>

<mosaic_0001>
module attributes {stable_mosaic.version = 11 : i64} {
  func.func @decoder_layer_kernel(%arg0: i32, %arg1: i32, %arg2: memref<1x8x32xf32, #tpu.memory_space<vmem>>, %arg3: memref<1x8x32xf32, #tpu.memory_space<vmem>>, %arg4: memref<1x8x32xf32, #tpu.memory_space<vmem>>, %arg5: memref<8x8xbf16, #tpu.memory_space<vmem>>, %arg6: memref<1x8x8xbf16, #tpu.memory_space<vmem>>, %arg7: memref<32x32xbf16, #tpu.memory_space<vmem>>, %arg8: memref<1x32xf32, #tpu.memory_space<vmem>>, %arg9: memref<32x64xbf16, #tpu.memory_space<vmem>>, %arg10: memref<1x64xf32, #tpu.memory_space<vmem>>, %arg11: memref<32x32xbf16, #tpu.memory_space<vmem>>, %arg12: memref<1x32xf32, #tpu.memory_space<vmem>>, %arg13: memref<1x32xf32, #tpu.memory_space<vmem>>, %arg14: memref<1x32xf32, #tpu.memory_space<vmem>>, %arg15: memref<32x32xbf16, #tpu.memory_space<vmem>>, %arg16: memref<1x32xf32, #tpu.memory_space<vmem>>, %arg17: memref<32x64xbf16, #tpu.memory_space<vmem>>, %arg18: memref<1x64xf32, #tpu.memory_space<vmem>>, %arg19: memref<32x32xbf16, #tpu.memory_space<vmem>>, %arg20: memref<1x32xf32, #tpu.memory_space<vmem>>, %arg21: memref<1x32xf32, #tpu.memory_space<vmem>>, %arg22: memref<1x32xf32, #tpu.memory_space<vmem>>, %arg23: memref<32x64xbf16, #tpu.memory_space<vmem>>, %arg24: memref<1x64xf32, #tpu.memory_space<vmem>>, %arg25: memref<64x32xbf16, #tpu.memory_space<vmem>>, %arg26: memref<1x32xf32, #tpu.memory_space<vmem>>, %arg27: memref<1x32xf32, #tpu.memory_space<vmem>>, %arg28: memref<1x32xf32, #tpu.memory_space<vmem>>, %arg29: memref<1x8x32xf32, #tpu.memory_space<vmem>>, %arg30: memref<1x4x8x8xbf16, #tpu.memory_space<vmem>>, %arg31: memref<1x4x8x8xbf16, #tpu.memory_space<vmem>>) attributes {dimension_semantics = [#tpu.dimension_semantics<parallel>, #tpu.dimension_semantics<parallel>], iteration_bounds = array<i64: 2, 1>, scalar_prefetch = 0 : i64, scratch_operands = 0 : i64, tpu.core_type = #tpu.core_type<tc>, window_params = [{transform_indices = @transform_0, window_bounds = array<i64: 1, 8, 32>}, {transform_indices = @transform_1, window_bounds = array<i64: 1, 8, 32>}, {transform_indices = @transform_2, window_bounds = array<i64: 1, 8, 32>}, {transform_indices = @transform_3, window_bounds = array<i64: 8, 8>}, {transform_indices = @transform_4, window_bounds = array<i64: 1, 8, 8>}, {pipeline_mode = #tpu.pipeline_mode<synchronous>, transform_indices = @transform_5, window_bounds = array<i64: 32, 32>}, {pipeline_mode = #tpu.pipeline_mode<synchronous>, transform_indices = @transform_6, window_bounds = array<i64: 1, 32>}, {pipeline_mode = #tpu.pipeline_mode<synchronous>, transform_indices = @transform_7, window_bounds = array<i64: 32, 64>}, {pipeline_mode = #tpu.pipeline_mode<synchronous>, transform_indices = @transform_8, window_bounds = array<i64: 1, 64>}, {pipeline_mode = #tpu.pipeline_mode<synchronous>, transform_indices = @transform_9, window_bounds = array<i64: 32, 32>}, {pipeline_mode = #tpu.pipeline_mode<synchronous>, transform_indices = @transform_10, window_bounds = array<i64: 1, 32>}, {pipeline_mode = #tpu.pipeline_mode<synchronous>, transform_indices = @transform_11, window_bounds = array<i64: 1, 32>}, {pipeline_mode = #tpu.pipeline_mode<synchronous>, transform_indices = @transform_12, window_bounds = array<i64: 1, 32>}, {pipeline_mode = #tpu.pipeline_mode<synchronous>, transform_indices = @transform_13, window_bounds = array<i64: 32, 32>}, {pipeline_mode = #tpu.pipeline_mode<synchronous>, transform_indices = @transform_14, window_bounds = array<i64: 1, 32>}, {pipeline_mode = #tpu.pipeline_mode<synchronous>, transform_indices = @transform_15, window_bounds = array<i64: 32, 64>}, {pipeline_mode = #tpu.pipeline_mode<synchronous>, transform_indices = @transform_16, window_bounds = array<i64: 1, 64>}, {pipeline_mode = #tpu.pipeline_mode<synchronous>, transform_indices = @transform_17, window_bounds = array<i64: 32, 32>}, {pipeline_mode = #tpu.pipeline_mode<synchronous>, transform_indices = @transform_18, window_bounds = array<i64: 1, 32>}, {pipeline_mode = #tpu.pipeline_mode<synchronous>, transform_indices = @transform_19, window_bounds = array<i64: 1, 32>}, {pipeline_mode = #tpu.pipeline_mode<synchronous>, transform_indices = @transform_20, window_bounds = array<i64: 1, 32>}, {pipeline_mode = #tpu.pipeline_mode<synchronous>, transform_indices = @transform_21, window_bounds = array<i64: 32, 64>}, {pipeline_mode = #tpu.pipeline_mode<synchronous>, transform_indices = @transform_22, window_bounds = array<i64: 1, 64>}, {pipeline_mode = #tpu.pipeline_mode<synchronous>, transform_indices = @transform_23, window_bounds = array<i64: 64, 32>}, {pipeline_mode = #tpu.pipeline_mode<synchronous>, transform_indices = @transform_24, window_bounds = array<i64: 1, 32>}, {pipeline_mode = #tpu.pipeline_mode<synchronous>, transform_indices = @transform_25, window_bounds = array<i64: 1, 32>}, {pipeline_mode = #tpu.pipeline_mode<synchronous>, transform_indices = @transform_26, window_bounds = array<i64: 1, 32>}, {transform_indices = @transform_27, window_bounds = array<i64: 1, 8, 32>}, {transform_indices = @transform_28, window_bounds = array<i64: 1, 4, 8, 8>}, {transform_indices = @transform_29, window_bounds = array<i64: 1, 4, 8, 8>}]} {
    %c0 = arith.constant 0 : index
    %c0_0 = arith.constant 0 : index
    %c0_1 = arith.constant 0 : index
    %0 = vector.load %arg2[%c0, %c0_0, %c0_1] : memref<1x8x32xf32, #tpu.memory_space<vmem>>, vector<1x8x32xf32>
    %1 = vector.shape_cast %0 : vector<1x8x32xf32> to vector<8x32xf32>
    %2 = arith.truncf %1 : vector<8x32xf32> to vector<8x32xbf16>
    %c0_2 = arith.constant 0 : index
    %c0_3 = arith.constant 0 : index
    %c0_4 = arith.constant 0 : index
    %3 = vector.load %arg3[%c0_2, %c0_3, %c0_4] : memref<1x8x32xf32, #tpu.memory_space<vmem>>, vector<1x8x32xf32>
    %4 = vector.shape_cast %3 : vector<1x8x32xf32> to vector<8x32xf32>
    %5 = arith.truncf %4 : vector<8x32xf32> to vector<8x32xbf16>
    %c0_5 = arith.constant 0 : index
    %c0_6 = arith.constant 0 : index
    %c0_7 = arith.constant 0 : index
    %6 = vector.load %arg4[%c0_5, %c0_6, %c0_7] : memref<1x8x32xf32, #tpu.memory_space<vmem>>, vector<1x8x32xf32>
    %7 = vector.shape_cast %6 : vector<1x8x32xf32> to vector<8x32xf32>
    %8 = arith.truncf %7 : vector<8x32xf32> to vector<8x32xbf16>
    %c0_8 = arith.constant 0 : index
    %c0_9 = arith.constant 0 : index
    %9 = vector.load %arg7[%c0_8, %c0_9] : memref<32x32xbf16, #tpu.memory_space<vmem>>, vector<32x32xbf16>
    %cst = arith.constant dense<0.000000e+00> : vector<8x32xf32>
    %10 = tpu.matmul %2, %9, %cst {dimension_numbers = #tpu.dot_dimension_numbers<[1], [0], [0], [1], [0, 0, 1, 1], [], []>} : vector<8x32xbf16>, vector<32x32xbf16>, vector<8x32xf32> -> vector<8x32xf32>
    %c0_10 = arith.constant 0 : index
    %c0_11 = arith.constant 0 : index
    %11 = vector.load %arg8[%c0_10, %c0_11] : memref<1x32xf32, #tpu.memory_space<vmem>>, vector<1x32xf32>
    %12 = vector.shape_cast %11 : vector<1x32xf32> to vector<32xf32>
    %13 = vector.shape_cast %12 : vector<32xf32> to vector<1x32xf32>
    %14 = vector.broadcast %13 : vector<1x32xf32> to vector<8x32xf32>
    %15 = arith.addf %10, %14 : vector<8x32xf32>
    %c0_12 = arith.constant 0 : index
    %c0_13 = arith.constant 0 : index
    %16 = vector.load %arg9[%c0_12, %c0_13] : memref<32x64xbf16, #tpu.memory_space<vmem>>, vector<32x64xbf16>
    %cst_14 = arith.constant dense<0.000000e+00> : vector<8x64xf32>
    %17 = tpu.matmul %5, %16, %cst_14 {dimension_numbers = #tpu.dot_dimension_numbers<[1], [0], [0], [1], [0, 0, 1, 1], [], []>} : vector<8x32xbf16>, vector<32x64xbf16>, vector<8x64xf32> -> vector<8x64xf32>
    %c0_15 = arith.constant 0 : index
    %c0_16 = arith.constant 0 : index
    %18 = vector.load %arg10[%c0_15, %c0_16] : memref<1x64xf32, #tpu.memory_space<vmem>>, vector<1x64xf32>
    %19 = vector.shape_cast %18 : vector<1x64xf32> to vector<64xf32>
    %20 = vector.shape_cast %19 : vector<64xf32> to vector<1x64xf32>
    %21 = vector.broadcast %20 : vector<1x64xf32> to vector<8x64xf32>
    %22 = arith.addf %17, %21 : vector<8x64xf32>
    %23 = vector.extract_strided_slice %22 {offsets = [0, 0], sizes = [8, 32], strides = [1, 1]} : vector<8x64xf32> to vector<8x32xf32>
    %24 = vector.extract_strided_slice %22 {offsets = [0, 32], sizes = [8, 32], strides = [1, 1]} : vector<8x64xf32> to vector<8x32xf32>
    %c0_17 = arith.constant 0 : index
    %c0_18 = arith.constant 0 : index
    %25 = vector.load %arg5[%c0_17, %c0_18] : memref<8x8xbf16, #tpu.memory_space<vmem>>, vector<8x8xbf16>
    %c0_19 = arith.constant 0 : index
    %c0_20 = arith.constant 0 : index
    %26 = vector.load %arg11[%c0_19, %c0_20] : memref<32x32xbf16, #tpu.memory_space<vmem>>, vector<32x32xbf16>
    %c0_21 = arith.constant 0 : index
    %c0_22 = arith.constant 0 : index
    %27 = vector.load %arg12[%c0_21, %c0_22] : memref<1x32xf32, #tpu.memory_space<vmem>>, vector<1x32xf32>
    %28 = vector.shape_cast %27 : vector<1x32xf32> to vector<32xf32>
    %29 = vector.extract_strided_slice %15 {offsets = [0, 0], sizes = [8, 8], strides = [1, 1]} : vector<8x32xf32> to vector<8x8xf32>
    %30 = vector.extract_strided_slice %15 {offsets = [0, 8], sizes = [8, 8], strides = [1, 1]} : vector<8x32xf32> to vector<8x8xf32>
    %31 = vector.extract_strided_slice %15 {offsets = [0, 16], sizes = [8, 8], strides = [1, 1]} : vector<8x32xf32> to vector<8x8xf32>
    %32 = vector.extract_strided_slice %15 {offsets = [0, 24], sizes = [8, 8], strides = [1, 1]} : vector<8x32xf32> to vector<8x8xf32>
    %33 = vector.shape_cast %29 : vector<8x8xf32> to vector<1x8x8xf32>
    %34 = vector.shape_cast %30 : vector<8x8xf32> to vector<1x8x8xf32>
    %35 = vector.shape_cast %31 : vector<8x8xf32> to vector<1x8x8xf32>
    %36 = vector.shape_cast %32 : vector<8x8xf32> to vector<1x8x8xf32>
    %37 = tpu.concatenate %33, %34, %35, %36 in 0 : vector<1x8x8xf32>, vector<1x8x8xf32>, vector<1x8x8xf32>, vector<1x8x8xf32> -> vector<4x8x8xf32>
    %38 = arith.truncf %37 : vector<4x8x8xf32> to vector<4x8x8xbf16>
    %39 = vector.extract_strided_slice %23 {offsets = [0, 0], sizes = [8, 8], strides = [1, 1]} : vector<8x32xf32> to vector<8x8xf32>
    %40 = vector.extract_strided_slice %23 {offsets = [0, 8], sizes = [8, 8], strides = [1, 1]} : vector<8x32xf32> to vector<8x8xf32>
    %41 = vector.extract_strided_slice %23 {offsets = [0, 16], sizes = [8, 8], strides = [1, 1]} : vector<8x32xf32> to vector<8x8xf32>
    %42 = vector.extract_strided_slice %23 {offsets = [0, 24], sizes = [8, 8], strides = [1, 1]} : vector<8x32xf32> to vector<8x8xf32>
    %43 = vector.shape_cast %39 : vector<8x8xf32> to vector<1x8x8xf32>
    %44 = vector.shape_cast %40 : vector<8x8xf32> to vector<1x8x8xf32>
    %45 = vector.shape_cast %41 : vector<8x8xf32> to vector<1x8x8xf32>
    %46 = vector.shape_cast %42 : vector<8x8xf32> to vector<1x8x8xf32>
    %47 = tpu.concatenate %43, %44, %45, %46 in 0 : vector<1x8x8xf32>, vector<1x8x8xf32>, vector<1x8x8xf32>, vector<1x8x8xf32> -> vector<4x8x8xf32>
    %48 = arith.truncf %47 : vector<4x8x8xf32> to vector<4x8x8xbf16>
    %49 = vector.extract_strided_slice %24 {offsets = [0, 0], sizes = [8, 8], strides = [1, 1]} : vector<8x32xf32> to vector<8x8xf32>
    %50 = vector.extract_strided_slice %24 {offsets = [0, 8], sizes = [8, 8], strides = [1, 1]} : vector<8x32xf32> to vector<8x8xf32>
    %51 = vector.extract_strided_slice %24 {offsets = [0, 16], sizes = [8, 8], strides = [1, 1]} : vector<8x32xf32> to vector<8x8xf32>
    %52 = vector.extract_strided_slice %24 {offsets = [0, 24], sizes = [8, 8], strides = [1, 1]} : vector<8x32xf32> to vector<8x8xf32>
    %53 = vector.shape_cast %49 : vector<8x8xf32> to vector<1x8x8xf32>
    %54 = vector.shape_cast %50 : vector<8x8xf32> to vector<1x8x8xf32>
    %55 = vector.shape_cast %51 : vector<8x8xf32> to vector<1x8x8xf32>
    %56 = vector.shape_cast %52 : vector<8x8xf32> to vector<1x8x8xf32>
    %57 = tpu.concatenate %53, %54, %55, %56 in 0 : vector<1x8x8xf32>, vector<1x8x8xf32>, vector<1x8x8xf32>, vector<1x8x8xf32> -> vector<4x8x8xf32>
    %58 = arith.truncf %57 : vector<4x8x8xf32> to vector<4x8x8xbf16>
    "tpu.trace_start"() <{level = 10 : i32, message = "hqd,hkd->hqk"}> : () -> ()
    %cst_23 = arith.constant dense<0.000000e+00> : vector<4x8x8xf32>
    %59 = tpu.matmul %38, %48, %cst_23 {dimension_numbers = #tpu.dot_dimension_numbers<[2], [2], [1], [1], [0, 0, 0, 1, 1, 1], [0], [0]>} : vector<4x8x8xbf16>, vector<4x8x8xbf16>, vector<4x8x8xf32> -> vector<4x8x8xf32>
    "tpu.trace_stop"() : () -> ()
    %60 = vector.shape_cast %25 : vector<8x8xbf16> to vector<1x8x8xbf16>
    %61 = arith.extf %60 : vector<1x8x8xbf16> to vector<1x8x8xf32>
    %62 = vector.broadcast %61 : vector<1x8x8xf32> to vector<4x8x8xf32>
    %63 = arith.addf %59, %62 : vector<4x8x8xf32>
    %cst_24 = arith.constant dense<0xFF800000> : vector<4x8xf32>
    %64 = vector.multi_reduction <maximumf>, %63, %cst_24 [2] : vector<4x8x8xf32> to vector<4x8xf32>
    %65 = vector.shape_cast %64 : vector<4x8xf32> to vector<4x8x1xf32>
    %66 = vector.broadcast %65 : vector<4x8x1xf32> to vector<4x8x8xf32>
    %67 = arith.subf %63, %66 : vector<4x8x8xf32>
    %68 = math.exp %67 : vector<4x8x8xf32>
    %cst_25 = arith.constant dense<0.000000e+00> : vector<4x8xf32>
    %69 = vector.multi_reduction <add>, %68, %cst_25 [2] : vector<4x8x8xf32> to vector<4x8xf32>
    %70 = vector.shape_cast %69 : vector<4x8xf32> to vector<4x8x1xf32>
    %71 = tpu.reciprocal %70 {approx = true} : vector<4x8x1xf32> -> vector<4x8x1xf32>
    %72 = vector.broadcast %71 : vector<4x8x1xf32> to vector<4x8x8xf32>
    %73 = arith.mulf %68, %72 : vector<4x8x8xf32>
    %74 = arith.truncf %73 : vector<4x8x8xf32> to vector<4x8x8xbf16>
    "tpu.trace_start"() <{level = 10 : i32, message = "hqk,hkd->hqd"}> : () -> ()
    %cst_26 = arith.constant dense<0.000000e+00> : vector<4x8x8xf32>
    %75 = tpu.matmul %74, %58, %cst_26 {dimension_numbers = #tpu.dot_dimension_numbers<[2], [1], [1], [2], [0, 0, 0, 1, 1, 2], [0], [0]>} : vector<4x8x8xbf16>, vector<4x8x8xbf16>, vector<4x8x8xf32> -> vector<4x8x8xf32>
    "tpu.trace_stop"() : () -> ()
    %76 = vector.extract_strided_slice %75 {offsets = [0, 0, 0], sizes = [1, 8, 8], strides = [1, 1, 1]} : vector<4x8x8xf32> to vector<1x8x8xf32>
    %77 = vector.shape_cast %76 : vector<1x8x8xf32> to vector<8x8xf32>
    %78 = vector.extract_strided_slice %75 {offsets = [1, 0, 0], sizes = [1, 8, 8], strides = [1, 1, 1]} : vector<4x8x8xf32> to vector<1x8x8xf32>
    %79 = vector.shape_cast %78 : vector<1x8x8xf32> to vector<8x8xf32>
    %80 = vector.extract_strided_slice %75 {offsets = [2, 0, 0], sizes = [1, 8, 8], strides = [1, 1, 1]} : vector<4x8x8xf32> to vector<1x8x8xf32>
    %81 = vector.shape_cast %80 : vector<1x8x8xf32> to vector<8x8xf32>
    %82 = vector.extract_strided_slice %75 {offsets = [3, 0, 0], sizes = [1, 8, 8], strides = [1, 1, 1]} : vector<4x8x8xf32> to vector<1x8x8xf32>
    %83 = vector.shape_cast %82 : vector<1x8x8xf32> to vector<8x8xf32>
    %84 = tpu.concatenate %77, %79, %81, %83 in 1 : vector<8x8xf32>, vector<8x8xf32>, vector<8x8xf32>, vector<8x8xf32> -> vector<8x32xf32>
    %85 = arith.truncf %84 : vector<8x32xf32> to vector<8x32xbf16>
    %cst_27 = arith.constant dense<0.000000e+00> : vector<8x32xf32>
    %86 = tpu.matmul %85, %26, %cst_27 {dimension_numbers = #tpu.dot_dimension_numbers<[1], [0], [0], [1], [0, 0, 1, 1], [], []>} : vector<8x32xbf16>, vector<32x32xbf16>, vector<8x32xf32> -> vector<8x32xf32>
    %87 = vector.shape_cast %28 : vector<32xf32> to vector<1x32xf32>
    %88 = vector.broadcast %87 : vector<1x32xf32> to vector<8x32xf32>
    %89 = arith.addf %86, %88 : vector<8x32xf32>
    %90 = arith.addf %89, %1 : vector<8x32xf32>
    %c0_28 = arith.constant 0 : index
    %c0_29 = arith.constant 0 : index
    %91 = vector.load %arg13[%c0_28, %c0_29] : memref<1x32xf32, #tpu.memory_space<vmem>>, vector<1x32xf32>
    %92 = vector.shape_cast %91 : vector<1x32xf32> to vector<32xf32>
    %c0_30 = arith.constant 0 : index
    %c0_31 = arith.constant 0 : index
    %93 = vector.load %arg14[%c0_30, %c0_31] : memref<1x32xf32, #tpu.memory_space<vmem>>, vector<1x32xf32>
    %94 = vector.shape_cast %93 : vector<1x32xf32> to vector<32xf32>
    %cst_32 = arith.constant dense<0.000000e+00> : vector<8xf32>
    %95 = vector.multi_reduction <add>, %90, %cst_32 [1] : vector<8x32xf32> to vector<8xf32>
    %96 = vector.shape_cast %95 : vector<8xf32> to vector<8x1xf32>
    %cst_33 = arith.constant 3.200000e+01 : f32
    %97 = vector.broadcast %cst_33 : f32 to vector<8x1xf32>
    %98 = arith.divf %96, %97 : vector<8x1xf32>
    %99 = vector.broadcast %98 : vector<8x1xf32> to vector<8x32xf32>
    %100 = arith.subf %90, %99 : vector<8x32xf32>
    %101 = arith.mulf %100, %100 : vector<8x32xf32>
    %cst_34 = arith.constant dense<0.000000e+00> : vector<8xf32>
    %102 = vector.multi_reduction <add>, %101, %cst_34 [1] : vector<8x32xf32> to vector<8xf32>
    %103 = vector.shape_cast %102 : vector<8xf32> to vector<8x1xf32>
    %cst_35 = arith.constant 3.200000e+01 : f32
    %104 = vector.broadcast %cst_35 : f32 to vector<8x1xf32>
    %105 = arith.divf %103, %104 : vector<8x1xf32>
    %106 = vector.broadcast %98 : vector<8x1xf32> to vector<8x32xf32>
    %107 = arith.subf %90, %106 : vector<8x32xf32>
    %cst_36 = arith.constant 9.99999974E-6 : f32
    %108 = vector.broadcast %cst_36 : f32 to vector<8x1xf32>
    %109 = arith.addf %105, %108 : vector<8x1xf32>
    %110 = math.rsqrt %109 : vector<8x1xf32>
    %111 = vector.broadcast %110 : vector<8x1xf32> to vector<8x32xf32>
    %112 = arith.mulf %107, %111 : vector<8x32xf32>
    %113 = vector.shape_cast %92 : vector<32xf32> to vector<1x32xf32>
    %114 = vector.broadcast %113 : vector<1x32xf32> to vector<8x32xf32>
    %115 = arith.mulf %112, %114 : vector<8x32xf32>
    %116 = vector.shape_cast %94 : vector<32xf32> to vector<1x32xf32>
    %117 = vector.broadcast %116 : vector<1x32xf32> to vector<8x32xf32>
    %118 = arith.addf %115, %117 : vector<8x32xf32>
    %119 = arith.truncf %73 : vector<4x8x8xf32> to vector<4x8x8xbf16>
    %c0_37 = arith.constant 0 : index
    %c0_38 = arith.constant 0 : index
    %c0_39 = arith.constant 0 : index
    %c0_40 = arith.constant 0 : index
    %120 = vector.load %arg30[%c0_37, %c0_38, %c0_39, %c0_40] : memref<1x4x8x8xbf16, #tpu.memory_space<vmem>>, vector<1x4x8x8xbf16>
    %121 = vector.shape_cast %120 : vector<1x4x8x8xbf16> to vector<4x8x8xbf16>
    %122 = vector.shape_cast %119 : vector<4x8x8xbf16> to vector<1x4x8x8xbf16>
    tpu.vector_store %arg30[%c0_37, %c0_38, %c0_39, %c0_40], %122 {strides = array<i32>} : memref<1x4x8x8xbf16, #tpu.memory_space<vmem>>, vector<1x4x8x8xbf16>,
    %123 = arith.truncf %118 : vector<8x32xf32> to vector<8x32xbf16>
    %c0_41 = arith.constant 0 : index
    %c0_42 = arith.constant 0 : index
    %124 = vector.load %arg15[%c0_41, %c0_42] : memref<32x32xbf16, #tpu.memory_space<vmem>>, vector<32x32xbf16>
    %cst_43 = arith.constant dense<0.000000e+00> : vector<8x32xf32>
    %125 = tpu.matmul %123, %124, %cst_43 {dimension_numbers = #tpu.dot_dimension_numbers<[1], [0], [0], [1], [0, 0, 1, 1], [], []>} : vector<8x32xbf16>, vector<32x32xbf16>, vector<8x32xf32> -> vector<8x32xf32>
    %c0_44 = arith.constant 0 : index
    %c0_45 = arith.constant 0 : index
    %126 = vector.load %arg16[%c0_44, %c0_45] : memref<1x32xf32, #tpu.memory_space<vmem>>, vector<1x32xf32>
    %127 = vector.shape_cast %126 : vector<1x32xf32> to vector<32xf32>
    %128 = vector.shape_cast %127 : vector<32xf32> to vector<1x32xf32>
    %129 = vector.broadcast %128 : vector<1x32xf32> to vector<8x32xf32>
    %130 = arith.addf %125, %129 : vector<8x32xf32>
    %c0_46 = arith.constant 0 : index
    %c0_47 = arith.constant 0 : index
    %131 = vector.load %arg17[%c0_46, %c0_47] : memref<32x64xbf16, #tpu.memory_space<vmem>>, vector<32x64xbf16>
    %cst_48 = arith.constant dense<0.000000e+00> : vector<8x64xf32>
    %132 = tpu.matmul %8, %131, %cst_48 {dimension_numbers = #tpu.dot_dimension_numbers<[1], [0], [0], [1], [0, 0, 1, 1], [], []>} : vector<8x32xbf16>, vector<32x64xbf16>, vector<8x64xf32> -> vector<8x64xf32>
    %c0_49 = arith.constant 0 : index
    %c0_50 = arith.constant 0 : index
    %133 = vector.load %arg18[%c0_49, %c0_50] : memref<1x64xf32, #tpu.memory_space<vmem>>, vector<1x64xf32>
    %134 = vector.shape_cast %133 : vector<1x64xf32> to vector<64xf32>
    %135 = vector.shape_cast %134 : vector<64xf32> to vector<1x64xf32>
    %136 = vector.broadcast %135 : vector<1x64xf32> to vector<8x64xf32>
    %137 = arith.addf %132, %136 : vector<8x64xf32>
    %138 = vector.extract_strided_slice %137 {offsets = [0, 0], sizes = [8, 32], strides = [1, 1]} : vector<8x64xf32> to vector<8x32xf32>
    %139 = vector.extract_strided_slice %137 {offsets = [0, 32], sizes = [8, 32], strides = [1, 1]} : vector<8x64xf32> to vector<8x32xf32>
    %c0_51 = arith.constant 0 : index
    %c0_52 = arith.constant 0 : index
    %c0_53 = arith.constant 0 : index
    %140 = vector.load %arg6[%c0_51, %c0_52, %c0_53] : memref<1x8x8xbf16, #tpu.memory_space<vmem>>, vector<1x8x8xbf16>
    %141 = vector.shape_cast %140 : vector<1x8x8xbf16> to vector<8x8xbf16>
    %c0_54 = arith.constant 0 : index
    %c0_55 = arith.constant 0 : index
    %142 = vector.load %arg19[%c0_54, %c0_55] : memref<32x32xbf16, #tpu.memory_space<vmem>>, vector<32x32xbf16>
    %c0_56 = arith.constant 0 : index
    %c0_57 = arith.constant 0 : index
    %143 = vector.load %arg20[%c0_56, %c0_57] : memref<1x32xf32, #tpu.memory_space<vmem>>, vector<1x32xf32>
    %144 = vector.shape_cast %143 : vector<1x32xf32> to vector<32xf32>
    %145 = vector.extract_strided_slice %130 {offsets = [0, 0], sizes = [8, 8], strides = [1, 1]} : vector<8x32xf32> to vector<8x8xf32>
    %146 = vector.extract_strided_slice %130 {offsets = [0, 8], sizes = [8, 8], strides = [1, 1]} : vector<8x32xf32> to vector<8x8xf32>
    %147 = vector.extract_strided_slice %130 {offsets = [0, 16], sizes = [8, 8], strides = [1, 1]} : vector<8x32xf32> to vector<8x8xf32>
    %148 = vector.extract_strided_slice %130 {offsets = [0, 24], sizes = [8, 8], strides = [1, 1]} : vector<8x32xf32> to vector<8x8xf32>
    %149 = vector.shape_cast %145 : vector<8x8xf32> to vector<1x8x8xf32>
    %150 = vector.shape_cast %146 : vector<8x8xf32> to vector<1x8x8xf32>
    %151 = vector.shape_cast %147 : vector<8x8xf32> to vector<1x8x8xf32>
    %152 = vector.shape_cast %148 : vector<8x8xf32> to vector<1x8x8xf32>
    %153 = tpu.concatenate %149, %150, %151, %152 in 0 : vector<1x8x8xf32>, vector<1x8x8xf32>, vector<1x8x8xf32>, vector<1x8x8xf32> -> vector<4x8x8xf32>
    %154 = arith.truncf %153 : vector<4x8x8xf32> to vector<4x8x8xbf16>
    %155 = vector.extract_strided_slice %138 {offsets = [0, 0], sizes = [8, 8], strides = [1, 1]} : vector<8x32xf32> to vector<8x8xf32>
    %156 = vector.extract_strided_slice %138 {offsets = [0, 8], sizes = [8, 8], strides = [1, 1]} : vector<8x32xf32> to vector<8x8xf32>
    %157 = vector.extract_strided_slice %138 {offsets = [0, 16], sizes = [8, 8], strides = [1, 1]} : vector<8x32xf32> to vector<8x8xf32>
    %158 = vector.extract_strided_slice %138 {offsets = [0, 24], sizes = [8, 8], strides = [1, 1]} : vector<8x32xf32> to vector<8x8xf32>
    %159 = vector.shape_cast %155 : vector<8x8xf32> to vector<1x8x8xf32>
    %160 = vector.shape_cast %156 : vector<8x8xf32> to vector<1x8x8xf32>
    %161 = vector.shape_cast %157 : vector<8x8xf32> to vector<1x8x8xf32>
    %162 = vector.shape_cast %158 : vector<8x8xf32> to vector<1x8x8xf32>
    %163 = tpu.concatenate %159, %160, %161, %162 in 0 : vector<1x8x8xf32>, vector<1x8x8xf32>, vector<1x8x8xf32>, vector<1x8x8xf32> -> vector<4x8x8xf32>
    %164 = arith.truncf %163 : vector<4x8x8xf32> to vector<4x8x8xbf16>
    %165 = vector.extract_strided_slice %139 {offsets = [0, 0], sizes = [8, 8], strides = [1, 1]} : vector<8x32xf32> to vector<8x8xf32>
    %166 = vector.extract_strided_slice %139 {offsets = [0, 8], sizes = [8, 8], strides = [1, 1]} : vector<8x32xf32> to vector<8x8xf32>
    %167 = vector.extract_strided_slice %139 {offsets = [0, 16], sizes = [8, 8], strides = [1, 1]} : vector<8x32xf32> to vector<8x8xf32>
    %168 = vector.extract_strided_slice %139 {offsets = [0, 24], sizes = [8, 8], strides = [1, 1]} : vector<8x32xf32> to vector<8x8xf32>
    %169 = vector.shape_cast %165 : vector<8x8xf32> to vector<1x8x8xf32>
    %170 = vector.shape_cast %166 : vector<8x8xf32> to vector<1x8x8xf32>
    %171 = vector.shape_cast %167 : vector<8x8xf32> to vector<1x8x8xf32>
    %172 = vector.shape_cast %168 : vector<8x8xf32> to vector<1x8x8xf32>
    %173 = tpu.concatenate %169, %170, %171, %172 in 0 : vector<1x8x8xf32>, vector<1x8x8xf32>, vector<1x8x8xf32>, vector<1x8x8xf32> -> vector<4x8x8xf32>
    %174 = arith.truncf %173 : vector<4x8x8xf32> to vector<4x8x8xbf16>
    "tpu.trace_start"() <{level = 10 : i32, message = "hqd,hkd->hqk"}> : () -> ()
    %cst_58 = arith.constant dense<0.000000e+00> : vector<4x8x8xf32>
    %175 = tpu.matmul %154, %164, %cst_58 {dimension_numbers = #tpu.dot_dimension_numbers<[2], [2], [1], [1], [0, 0, 0, 1, 1, 1], [0], [0]>} : vector<4x8x8xbf16>, vector<4x8x8xbf16>, vector<4x8x8xf32> -> vector<4x8x8xf32>
    "tpu.trace_stop"() : () -> ()
    %176 = vector.shape_cast %141 : vector<8x8xbf16> to vector<1x8x8xbf16>
    %177 = arith.extf %176 : vector<1x8x8xbf16> to vector<1x8x8xf32>
    %178 = vector.broadcast %177 : vector<1x8x8xf32> to vector<4x8x8xf32>
    %179 = arith.addf %175, %178 : vector<4x8x8xf32>
    %cst_59 = arith.constant dense<0xFF800000> : vector<4x8xf32>
    %180 = vector.multi_reduction <maximumf>, %179, %cst_59 [2] : vector<4x8x8xf32> to vector<4x8xf32>
    %181 = vector.shape_cast %180 : vector<4x8xf32> to vector<4x8x1xf32>
    %182 = vector.broadcast %181 : vector<4x8x1xf32> to vector<4x8x8xf32>
    %183 = arith.subf %179, %182 : vector<4x8x8xf32>
    %184 = math.exp %183 : vector<4x8x8xf32>
    %cst_60 = arith.constant dense<0.000000e+00> : vector<4x8xf32>
    %185 = vector.multi_reduction <add>, %184, %cst_60 [2] : vector<4x8x8xf32> to vector<4x8xf32>
    %186 = vector.shape_cast %185 : vector<4x8xf32> to vector<4x8x1xf32>
    %187 = tpu.reciprocal %186 {approx = true} : vector<4x8x1xf32> -> vector<4x8x1xf32>
    %188 = vector.broadcast %187 : vector<4x8x1xf32> to vector<4x8x8xf32>
    %189 = arith.mulf %184, %188 : vector<4x8x8xf32>
    %190 = arith.truncf %189 : vector<4x8x8xf32> to vector<4x8x8xbf16>
    "tpu.trace_start"() <{level = 10 : i32, message = "hqk,hkd->hqd"}> : () -> ()
    %cst_61 = arith.constant dense<0.000000e+00> : vector<4x8x8xf32>
    %191 = tpu.matmul %190, %174, %cst_61 {dimension_numbers = #tpu.dot_dimension_numbers<[2], [1], [1], [2], [0, 0, 0, 1, 1, 2], [0], [0]>} : vector<4x8x8xbf16>, vector<4x8x8xbf16>, vector<4x8x8xf32> -> vector<4x8x8xf32>
    "tpu.trace_stop"() : () -> ()
    %192 = vector.extract_strided_slice %191 {offsets = [0, 0, 0], sizes = [1, 8, 8], strides = [1, 1, 1]} : vector<4x8x8xf32> to vector<1x8x8xf32>
    %193 = vector.shape_cast %192 : vector<1x8x8xf32> to vector<8x8xf32>
    %194 = vector.extract_strided_slice %191 {offsets = [1, 0, 0], sizes = [1, 8, 8], strides = [1, 1, 1]} : vector<4x8x8xf32> to vector<1x8x8xf32>
    %195 = vector.shape_cast %194 : vector<1x8x8xf32> to vector<8x8xf32>
    %196 = vector.extract_strided_slice %191 {offsets = [2, 0, 0], sizes = [1, 8, 8], strides = [1, 1, 1]} : vector<4x8x8xf32> to vector<1x8x8xf32>
    %197 = vector.shape_cast %196 : vector<1x8x8xf32> to vector<8x8xf32>
    %198 = vector.extract_strided_slice %191 {offsets = [3, 0, 0], sizes = [1, 8, 8], strides = [1, 1, 1]} : vector<4x8x8xf32> to vector<1x8x8xf32>
    %199 = vector.shape_cast %198 : vector<1x8x8xf32> to vector<8x8xf32>
    %200 = tpu.concatenate %193, %195, %197, %199 in 1 : vector<8x8xf32>, vector<8x8xf32>, vector<8x8xf32>, vector<8x8xf32> -> vector<8x32xf32>
    %201 = arith.truncf %200 : vector<8x32xf32> to vector<8x32xbf16>
    %cst_62 = arith.constant dense<0.000000e+00> : vector<8x32xf32>
    %202 = tpu.matmul %201, %142, %cst_62 {dimension_numbers = #tpu.dot_dimension_numbers<[1], [0], [0], [1], [0, 0, 1, 1], [], []>} : vector<8x32xbf16>, vector<32x32xbf16>, vector<8x32xf32> -> vector<8x32xf32>
    %203 = vector.shape_cast %144 : vector<32xf32> to vector<1x32xf32>
    %204 = vector.broadcast %203 : vector<1x32xf32> to vector<8x32xf32>
    %205 = arith.addf %202, %204 : vector<8x32xf32>
    %206 = arith.addf %205, %118 : vector<8x32xf32>
    %c0_63 = arith.constant 0 : index
    %c0_64 = arith.constant 0 : index
    %207 = vector.load %arg21[%c0_63, %c0_64] : memref<1x32xf32, #tpu.memory_space<vmem>>, vector<1x32xf32>
    %208 = vector.shape_cast %207 : vector<1x32xf32> to vector<32xf32>
    %c0_65 = arith.constant 0 : index
    %c0_66 = arith.constant 0 : index
    %209 = vector.load %arg22[%c0_65, %c0_66] : memref<1x32xf32, #tpu.memory_space<vmem>>, vector<1x32xf32>
    %210 = vector.shape_cast %209 : vector<1x32xf32> to vector<32xf32>
    %cst_67 = arith.constant dense<0.000000e+00> : vector<8xf32>
    %211 = vector.multi_reduction <add>, %206, %cst_67 [1] : vector<8x32xf32> to vector<8xf32>
    %212 = vector.shape_cast %211 : vector<8xf32> to vector<8x1xf32>
    %cst_68 = arith.constant 3.200000e+01 : f32
    %213 = vector.broadcast %cst_68 : f32 to vector<8x1xf32>
    %214 = arith.divf %212, %213 : vector<8x1xf32>
    %215 = vector.broadcast %214 : vector<8x1xf32> to vector<8x32xf32>
    %216 = arith.subf %206, %215 : vector<8x32xf32>
    %217 = arith.mulf %216, %216 : vector<8x32xf32>
    %cst_69 = arith.constant dense<0.000000e+00> : vector<8xf32>
    %218 = vector.multi_reduction <add>, %217, %cst_69 [1] : vector<8x32xf32> to vector<8xf32>
    %219 = vector.shape_cast %218 : vector<8xf32> to vector<8x1xf32>
    %cst_70 = arith.constant 3.200000e+01 : f32
    %220 = vector.broadcast %cst_70 : f32 to vector<8x1xf32>
    %221 = arith.divf %219, %220 : vector<8x1xf32>
    %222 = vector.broadcast %214 : vector<8x1xf32> to vector<8x32xf32>
    %223 = arith.subf %206, %222 : vector<8x32xf32>
    %cst_71 = arith.constant 9.99999974E-6 : f32
    %224 = vector.broadcast %cst_71 : f32 to vector<8x1xf32>
    %225 = arith.addf %221, %224 : vector<8x1xf32>
    %226 = math.rsqrt %225 : vector<8x1xf32>
    %227 = vector.broadcast %226 : vector<8x1xf32> to vector<8x32xf32>
    %228 = arith.mulf %223, %227 : vector<8x32xf32>
    %229 = vector.shape_cast %208 : vector<32xf32> to vector<1x32xf32>
    %230 = vector.broadcast %229 : vector<1x32xf32> to vector<8x32xf32>
    %231 = arith.mulf %228, %230 : vector<8x32xf32>
    %232 = vector.shape_cast %210 : vector<32xf32> to vector<1x32xf32>
    %233 = vector.broadcast %232 : vector<1x32xf32> to vector<8x32xf32>
    %234 = arith.addf %231, %233 : vector<8x32xf32>
    %235 = arith.truncf %189 : vector<4x8x8xf32> to vector<4x8x8xbf16>
    %c0_72 = arith.constant 0 : index
    %c0_73 = arith.constant 0 : index
    %c0_74 = arith.constant 0 : index
    %c0_75 = arith.constant 0 : index
    %236 = vector.load %arg31[%c0_72, %c0_73, %c0_74, %c0_75] : memref<1x4x8x8xbf16, #tpu.memory_space<vmem>>, vector<1x4x8x8xbf16>
    %237 = vector.shape_cast %236 : vector<1x4x8x8xbf16> to vector<4x8x8xbf16>
    %238 = vector.shape_cast %235 : vector<4x8x8xbf16> to vector<1x4x8x8xbf16>
    tpu.vector_store %arg31[%c0_72, %c0_73, %c0_74, %c0_75], %238 {strides = array<i32>} : memref<1x4x8x8xbf16, #tpu.memory_space<vmem>>, vector<1x4x8x8xbf16>,
    %239 = arith.truncf %234 : vector<8x32xf32> to vector<8x32xbf16>
    %c0_76 = arith.constant 0 : index
    %c0_77 = arith.constant 0 : index
    %240 = vector.load %arg23[%c0_76, %c0_77] : memref<32x64xbf16, #tpu.memory_space<vmem>>, vector<32x64xbf16>
    %cst_78 = arith.constant dense<0.000000e+00> : vector<8x64xf32>
    %241 = tpu.matmul %239, %240, %cst_78 {dimension_numbers = #tpu.dot_dimension_numbers<[1], [0], [0], [1], [0, 0, 1, 1], [], []>} : vector<8x32xbf16>, vector<32x64xbf16>, vector<8x64xf32> -> vector<8x64xf32>
    %c0_79 = arith.constant 0 : index
    %c0_80 = arith.constant 0 : index
    %242 = vector.load %arg24[%c0_79, %c0_80] : memref<1x64xf32, #tpu.memory_space<vmem>>, vector<1x64xf32>
    %243 = vector.shape_cast %242 : vector<1x64xf32> to vector<64xf32>
    %244 = vector.shape_cast %243 : vector<64xf32> to vector<1x64xf32>
    %245 = vector.broadcast %244 : vector<1x64xf32> to vector<8x64xf32>
    %246 = arith.addf %241, %245 : vector<8x64xf32>
    %cst_81 = arith.constant 0.000000e+00 : f32
    %247 = vector.broadcast %cst_81 : f32 to vector<8x64xf32>
    %248 = arith.maximumf %246, %247 : vector<8x64xf32>
    %249 = arith.truncf %248 : vector<8x64xf32> to vector<8x64xbf16>
    %c0_82 = arith.constant 0 : index
    %c0_83 = arith.constant 0 : index
    %250 = vector.load %arg25[%c0_82, %c0_83] : memref<64x32xbf16, #tpu.memory_space<vmem>>, vector<64x32xbf16>
    %cst_84 = arith.constant dense<0.000000e+00> : vector<8x32xf32>
    %251 = tpu.matmul %249, %250, %cst_84 {dimension_numbers = #tpu.dot_dimension_numbers<[1], [0], [0], [1], [0, 0, 1, 1], [], []>} : vector<8x64xbf16>, vector<64x32xbf16>, vector<8x32xf32> -> vector<8x32xf32>
    %c0_85 = arith.constant 0 : index
    %c0_86 = arith.constant 0 : index
    %252 = vector.load %arg26[%c0_85, %c0_86] : memref<1x32xf32, #tpu.memory_space<vmem>>, vector<1x32xf32>
    %253 = vector.shape_cast %252 : vector<1x32xf32> to vector<32xf32>
    %254 = vector.shape_cast %253 : vector<32xf32> to vector<1x32xf32>
    %255 = vector.broadcast %254 : vector<1x32xf32> to vector<8x32xf32>
    %256 = arith.addf %251, %255 : vector<8x32xf32>
    %257 = arith.addf %256, %234 : vector<8x32xf32>
    %c0_87 = arith.constant 0 : index
    %c0_88 = arith.constant 0 : index
    %258 = vector.load %arg27[%c0_87, %c0_88] : memref<1x32xf32, #tpu.memory_space<vmem>>, vector<1x32xf32>
    %259 = vector.shape_cast %258 : vector<1x32xf32> to vector<32xf32>
    %c0_89 = arith.constant 0 : index
    %c0_90 = arith.constant 0 : index
    %260 = vector.load %arg28[%c0_89, %c0_90] : memref<1x32xf32, #tpu.memory_space<vmem>>, vector<1x32xf32>
    %261 = vector.shape_cast %260 : vector<1x32xf32> to vector<32xf32>
    %cst_91 = arith.constant dense<0.000000e+00> : vector<8xf32>
    %262 = vector.multi_reduction <add>, %257, %cst_91 [1] : vector<8x32xf32> to vector<8xf32>
    %263 = vector.shape_cast %262 : vector<8xf32> to vector<8x1xf32>
    %cst_92 = arith.constant 3.200000e+01 : f32
    %264 = vector.broadcast %cst_92 : f32 to vector<8x1xf32>
    %265 = arith.divf %263, %264 : vector<8x1xf32>
    %266 = vector.broadcast %265 : vector<8x1xf32> to vector<8x32xf32>
    %267 = arith.subf %257, %266 : vector<8x32xf32>
    %268 = arith.mulf %267, %267 : vector<8x32xf32>
    %cst_93 = arith.constant dense<0.000000e+00> : vector<8xf32>
    %269 = vector.multi_reduction <add>, %268, %cst_93 [1] : vector<8x32xf32> to vector<8xf32>
    %270 = vector.shape_cast %269 : vector<8xf32> to vector<8x1xf32>
    %cst_94 = arith.constant 3.200000e+01 : f32
    %271 = vector.broadcast %cst_94 : f32 to vector<8x1xf32>
    %272 = arith.divf %270, %271 : vector<8x1xf32>
    %273 = vector.broadcast %265 : vector<8x1xf32> to vector<8x32xf32>
    %274 = arith.subf %257, %273 : vector<8x32xf32>
    %cst_95 = arith.constant 9.99999974E-6 : f32
    %275 = vector.broadcast %cst_95 : f32 to vector<8x1xf32>
    %276 = arith.addf %272, %275 : vector<8x1xf32>
    %277 = math.rsqrt %276 : vector<8x1xf32>
    %278 = vector.broadcast %277 : vector<8x1xf32> to vector<8x32xf32>
    %279 = arith.mulf %274, %278 : vector<8x32xf32>
    %280 = vector.shape_cast %259 : vector<32xf32> to vector<1x32xf32>
    %281 = vector.broadcast %280 : vector<1x32xf32> to vector<8x32xf32>
    %282 = arith.mulf %279, %281 : vector<8x32xf32>
    %283 = vector.shape_cast %261 : vector<32xf32> to vector<1x32xf32>
    %284 = vector.broadcast %283 : vector<1x32xf32> to vector<8x32xf32>
    %285 = arith.addf %282, %284 : vector<8x32xf32>
    %c0_96 = arith.constant 0 : index
    %c0_97 = arith.constant 0 : index
    %c0_98 = arith.constant 0 : index
    %286 = vector.load %arg29[%c0_96, %c0_97, %c0_98] : memref<1x8x32xf32, #tpu.memory_space<vmem>>, vector<1x8x32xf32>
    %287 = vector.shape_cast %286 : vector<1x8x32xf32> to vector<8x32xf32>
    %288 = vector.shape_cast %285 : vector<8x32xf32> to vector<1x8x32xf32>
    tpu.vector_store %arg29[%c0_96, %c0_97, %c0_98], %288 {strides = array<i32>} : memref<1x8x32xf32, #tpu.memory_space<vmem>>, vector<1x8x32xf32>,
    return
  }
  func.func @transform_0(%arg0: i32, %arg1: i32) -> (i32, i32, i32) {
    %c0_i32 = arith.constant 0 : i32
    %c0_i32_0 = arith.constant 0 : i32
    return %arg0, %arg1, %c0_i32 : i32, i32, i32
  }
  func.func @transform_1(%arg0: i32, %arg1: i32) -> (i32, i32, i32) {
    %c0_i32 = arith.constant 0 : i32
    %c0_i32_0 = arith.constant 0 : i32
    %c0_i32_1 = arith.constant 0 : i32
    return %arg0, %c0_i32, %c0_i32_0 : i32, i32, i32
  }
  func.func @transform_2(%arg0: i32, %arg1: i32) -> (i32, i32, i32) {
    %c0_i32 = arith.constant 0 : i32
    %c0_i32_0 = arith.constant 0 : i32
    %c0_i32_1 = arith.constant 0 : i32
    return %arg0, %c0_i32, %c0_i32_0 : i32, i32, i32
  }
  func.func @transform_3(%arg0: i32, %arg1: i32) -> (i32, i32) {
    %c0_i32 = arith.constant 0 : i32
    %c0_i32_0 = arith.constant 0 : i32
    return %arg1, %c0_i32 : i32, i32
  }
  func.func @transform_4(%arg0: i32, %arg1: i32) -> (i32, i32, i32) {
    %c0_i32 = arith.constant 0 : i32
    %c0_i32_0 = arith.constant 0 : i32
    return %arg0, %arg1, %c0_i32 : i32, i32, i32
  }
  func.func @transform_5(%arg0: i32, %arg1: i32) -> (i32, i32) {
    %c0_i32 = arith.constant 0 : i32
    %c0_i32_0 = arith.constant 0 : i32
    %c0_i32_1 = arith.constant 0 : i32
    return %c0_i32, %c0_i32_0 : i32, i32
  }
  func.func @transform_6(%arg0: i32, %arg1: i32) -> (i32, i32) {
    %c0_i32 = arith.constant 0 : i32
    %c0_i32_0 = arith.constant 0 : i32
    %c0_i32_1 = arith.constant 0 : i32
    return %c0_i32, %c0_i32_0 : i32, i32
  }
  func.func @transform_7(%arg0: i32, %arg1: i32) -> (i32, i32) {
    %c0_i32 = arith.constant 0 : i32
    %c0_i32_0 = arith.constant 0 : i32
    %c0_i32_1 = arith.constant 0 : i32
    return %c0_i32, %c0_i32_0 : i32, i32
  }
  func.func @transform_8(%arg0: i32, %arg1: i32) -> (i32, i32) {
    %c0_i32 = arith.constant 0 : i32
    %c0_i32_0 = arith.constant 0 : i32
    %c0_i32_1 = arith.constant 0 : i32
    return %c0_i32, %c0_i32_0 : i32, i32
  }
  func.func @transform_9(%arg0: i32, %arg1: i32) -> (i32, i32) {
    %c0_i32 = arith.constant 0 : i32
    %c0_i32_0 = arith.constant 0 : i32
    %c0_i32_1 = arith.constant 0 : i32
    return %c0_i32, %c0_i32_0 : i32, i32
  }
  func.func @transform_10(%arg0: i32, %arg1: i32) -> (i32, i32) {
    %c0_i32 = arith.constant 0 : i32
    %c0_i32_0 = arith.constant 0 : i32
    %c0_i32_1 = arith.constant 0 : i32
    return %c0_i32, %c0_i32_0 : i32, i32
  }
  func.func @transform_11(%arg0: i32, %arg1: i32) -> (i32, i32) {
    %c0_i32 = arith.constant 0 : i32
    %c0_i32_0 = arith.constant 0 : i32
    %c0_i32_1 = arith.constant 0 : i32
    return %c0_i32, %c0_i32_0 : i32, i32
  }
  func.func @transform_12(%arg0: i32, %arg1: i32) -> (i32, i32) {
    %c0_i32 = arith.constant 0 : i32
    %c0_i32_0 = arith.constant 0 : i32
    %c0_i32_1 = arith.constant 0 : i32
    return %c0_i32, %c0_i32_0 : i32, i32
  }
  func.func @transform_13(%arg0: i32, %arg1: i32) -> (i32, i32) {
    %c0_i32 = arith.constant 0 : i32
    %c0_i32_0 = arith.constant 0 : i32
    %c0_i32_1 = arith.constant 0 : i32
    return %c0_i32, %c0_i32_0 : i32, i32
  }
  func.func @transform_14(%arg0: i32, %arg1: i32) -> (i32, i32) {
    %c0_i32 = arith.constant 0 : i32
    %c0_i32_0 = arith.constant 0 : i32
    %c0_i32_1 = arith.constant 0 : i32
    return %c0_i32, %c0_i32_0 : i32, i32
  }
  func.func @transform_15(%arg0: i32, %arg1: i32) -> (i32, i32) {
    %c0_i32 = arith.constant 0 : i32
    %c0_i32_0 = arith.constant 0 : i32
    %c0_i32_1 = arith.constant 0 : i32
    return %c0_i32, %c0_i32_0 : i32, i32
  }
  func.func @transform_16(%arg0: i32, %arg1: i32) -> (i32, i32) {
    %c0_i32 = arith.constant 0 : i32
    %c0_i32_0 = arith.constant 0 : i32
    %c0_i32_1 = arith.constant 0 : i32
    return %c0_i32, %c0_i32_0 : i32, i32
  }
  func.func @transform_17(%arg0: i32, %arg1: i32) -> (i32, i32) {
    %c0_i32 = arith.constant 0 : i32
    %c0_i32_0 = arith.constant 0 : i32
    %c0_i32_1 = arith.constant 0 : i32
    return %c0_i32, %c0_i32_0 : i32, i32
  }
  func.func @transform_18(%arg0: i32, %arg1: i32) -> (i32, i32) {
    %c0_i32 = arith.constant 0 : i32
    %c0_i32_0 = arith.constant 0 : i32
    %c0_i32_1 = arith.constant 0 : i32
    return %c0_i32, %c0_i32_0 : i32, i32
  }
  func.func @transform_19(%arg0: i32, %arg1: i32) -> (i32, i32) {
    %c0_i32 = arith.constant 0 : i32
    %c0_i32_0 = arith.constant 0 : i32
    %c0_i32_1 = arith.constant 0 : i32
    return %c0_i32, %c0_i32_0 : i32, i32
  }
  func.func @transform_20(%arg0: i32, %arg1: i32) -> (i32, i32) {
    %c0_i32 = arith.constant 0 : i32
    %c0_i32_0 = arith.constant 0 : i32
    %c0_i32_1 = arith.constant 0 : i32
    return %c0_i32, %c0_i32_0 : i32, i32
  }
  func.func @transform_21(%arg0: i32, %arg1: i32) -> (i32, i32) {
    %c0_i32 = arith.constant 0 : i32
    %c0_i32_0 = arith.constant 0 : i32
    %c0_i32_1 = arith.constant 0 : i32
    return %c0_i32, %c0_i32_0 : i32, i32
  }
  func.func @transform_22(%arg0: i32, %arg1: i32) -> (i32, i32) {
    %c0_i32 = arith.constant 0 : i32
    %c0_i32_0 = arith.constant 0 : i32
    %c0_i32_1 = arith.constant 0 : i32
    return %c0_i32, %c0_i32_0 : i32, i32
  }
  func.func @transform_23(%arg0: i32, %arg1: i32) -> (i32, i32) {
    %c0_i32 = arith.constant 0 : i32
    %c0_i32_0 = arith.constant 0 : i32
    %c0_i32_1 = arith.constant 0 : i32
    return %c0_i32, %c0_i32_0 : i32, i32
  }
  func.func @transform_24(%arg0: i32, %arg1: i32) -> (i32, i32) {
    %c0_i32 = arith.constant 0 : i32
    %c0_i32_0 = arith.constant 0 : i32
    %c0_i32_1 = arith.constant 0 : i32
    return %c0_i32, %c0_i32_0 : i32, i32
  }
  func.func @transform_25(%arg0: i32, %arg1: i32) -> (i32, i32) {
    %c0_i32 = arith.constant 0 : i32
    %c0_i32_0 = arith.constant 0 : i32
    %c0_i32_1 = arith.constant 0 : i32
    return %c0_i32, %c0_i32_0 : i32, i32
  }
  func.func @transform_26(%arg0: i32, %arg1: i32) -> (i32, i32) {
    %c0_i32 = arith.constant 0 : i32
    %c0_i32_0 = arith.constant 0 : i32
    %c0_i32_1 = arith.constant 0 : i32
    return %c0_i32, %c0_i32_0 : i32, i32
  }
  func.func @transform_27(%arg0: i32, %arg1: i32) -> (i32, i32, i32) {
    %c0_i32 = arith.constant 0 : i32
    %c0_i32_0 = arith.constant 0 : i32
    return %arg0, %arg1, %c0_i32 : i32, i32, i32
  }
  func.func @transform_28(%arg0: i32, %arg1: i32) -> (i32, i32, i32, i32) {
    %c0_i32 = arith.constant 0 : i32
    %c0_i32_0 = arith.constant 0 : i32
    %c0_i32_1 = arith.constant 0 : i32
    return %arg0, %c0_i32, %arg1, %c0_i32_0 : i32, i32, i32, i32
  }
  func.func @transform_29(%arg0: i32, %arg1: i32) -> (i32, i32, i32, i32) {
    %c0_i32 = arith.constant 0 : i32
    %c0_i32_0 = arith.constant 0 : i32
    %c0_i32_1 = arith.constant 0 : i32
    return %arg0, %c0_i32, %arg1, %c0_i32_0 : i32, i32, i32, i32
  }
}

</mosaic_0001>

<bundles_post_ra>
// kernel: tpu_custom_call.1
= control target key start
LH: loop header
LB: loop body
LE: loop exit
PB: predicated region body
PF: predicated region fallthrough
CT: control target
= control target key end

     0   :  { %s4341_s6 = smov 1   ;;  %s4342_s10 = smov 2   ;;  %s5290_s0 = inlined_call_operand.smem [shape: u32[30], index: -1, kind: input, shape index: {}] }
   0x1   :  { %s4407_s5 = sld [smem:[%s5290_s0]]   ;;  %s4343_s14 = smov 3  }
   0x2   :  { %s4412_s9 = sld [smem:[%s5290_s0 + %s4341_s6]]   ;;  %s4344_s18 = smov 4  }
   0x3   :  { %s4417_s13 = sld [smem:[%s5290_s0 + %s4342_s10]]   ;;  %s4345_s22 = smov 5  }
   0x4   :  { %s4422_s17 = sld [smem:[%s5290_s0 + %s4343_s14]]   ;;  %s4346_s26 = smov 6  }
   0x5   :  { %s4427_s21 = sld [smem:[%s5290_s0 + %s4344_s18]]   ;;  %s4347_s30 = smov 7  }
   0x6   :  { %s4432_s25 = sld [smem:[%s5290_s0 + %s4345_s22]]   ;;  %s4348_s4 = smov 8  }
   0x7   :  { %5324 = sst [smem:[#allocation37_spill]] %s4407_s5  ;;  %s4349_s10 = smov 9  }
   0x8   :  { %5325 = sst [smem:[#allocation38_spill]] %s4412_s9  ;;  %s4350_s15 = smov 10  }
   0x9   :  { %5326 = sst [smem:[#allocation39_spill]] %s4417_s13  ;;  %s4351_s20 = smov 11  }
   0xa   :  { %5327 = sst [smem:[#allocation40_spill]] %s4422_s17  ;;  %s4353_s1 = smov 13  }
   0xb   :  { %5328 = sst [smem:[#allocation41_spill]] %s4427_s21  ;;  %s4354_s7 = smov 14  }
   0xc   :  { %s4437_s29 = sld [smem:[%s5290_s0 + %s4346_s26]]   ;;  %s4352_s26 = smov 12  }
   0xd   :  { %s4442_s3 = sld [smem:[%s5290_s0 + %s4347_s30]]   ;;  %s4356_s22 = smov 16  }
   0xe   :  { %s4447_s8 = sld [smem:[%s5290_s0 + %s4348_s4]]   ;;  %s4357_s28 = smov 17  }
   0xf   :  { %s4452_s14 = sld [smem:[%s5290_s0 + %s4349_s10]]  }
  0x10   :  { %s4457_s19 = sld [smem:[%s5290_s0 + %s4350_s15]]   ;;  %s4355_s15 = smov 15  }
  0x11   :  { %s4462_s24 = sld [smem:[%s5290_s0 + %s4351_s20]]  }
  0x12   :  { %s4467_s30 = sld [smem:[%s5290_s0 + %s4352_s26]]  }
  0x13   :  { %5329 = sst [smem:[#allocation42_spill]] %s4442_s3 }
  0x14   :  { %5330 = sst [smem:[#allocation43_spill]] %s4447_s8 }
  0x15   :  { %5331 = sst [smem:[#allocation44_spill]] %s4452_s14 }
  0x16   :  { %5332 = sst [smem:[#allocation45_spill]] %s4457_s19 }
  0x17   :  { %s4472_s6 = sld [smem:[%s5290_s0 + %s4353_s1]]  }
  0x18   :  { %s4477_s12 = sld [smem:[%s5290_s0 + %s4354_s7]]   ;;  %s4358_s7 = smov 18  }
  0x19   :  { %s4482_s20 = sld [smem:[%s5290_s0 + %s4355_s15]]   ;;  %s4359_s15 = smov 19  }
  0x1a   :  { %s4487_s27 = sld [smem:[%s5290_s0 + %s4356_s22]]   ;;  %s4360_s22 = smov 20  }
  0x1b   :  { %s4492_s4 = sld [smem:[%s5290_s0 + %s4357_s28]]   ;;  %s4361_s28 = smov 21  }
  0x1c   :  { %s4502_s13 = sld [smem:[%s5290_s0 + %s4359_s15]]   ;;  %s4363_s15 = smov 23  }
  0x1d   :  { %5333 = sst [smem:[#allocation46_spill]] %s4472_s6 }
  0x1e   :  { %5334 = sst [smem:[#allocation47_spill]] %s4477_s12 }
  0x1f   :  { %5335 = sst [smem:[#allocation48_spill]] %s4482_s20 }
  0x20   :  { %s4497_s6 = sld [smem:[%s5290_s0 + %s4358_s7]]   ;;  %s4362_s7 = smov 22  }
  0x21   :  { %5336 = sst [smem:[#allocation49_spill]] %s4492_s4 }
  0x22   :  { %5338 = sst [smem:[#allocation51_spill]] %s4502_s13 }
  0x23   :  { %s4507_s14 = sld [smem:[%s5290_s0 + %s4360_s22]]   ;;  %s4364_s22 = smov 24  }
  0x24   :  { %s4512_s4 = sld [smem:[%s5290_s0 + %s4361_s28]]   ;;  %s4365_s28 = smov 25  }
  0x25   :  { %s4522_s13 = sld [smem:[%s5290_s0 + %s4363_s15]]   ;;  %s4367_s15 = smov 27  }
  0x26   :  { %5337 = sst [smem:[#allocation50_spill]] %s4497_s6 }
  0x27   :  { %s4517_s6 = sld [smem:[%s5290_s0 + %s4362_s7]]   ;;  %s4366_s7 = smov 26  }
  0x28   :  { %s4532_s9 = sld [smem:[%s5290_s0 + %s4365_s28]]   ;;  %s4369_s28 = smov 29  }
  0x29   :  { %5339 = sst [smem:[#allocation52_spill]] %s4507_s14 }
  0x2a   :  { %5340 = sst [smem:[#allocation53_spill]] %s4512_s4 }
  0x2b   :  { %5342 = sst [smem:[#allocation55_spill]] %s4522_s13 }
  0x2c   :  { %s4527_s14 = sld [smem:[%s5290_s0 + %s4364_s22]]   ;;  %s4368_s22 = smov 28  }
  0x2d   :  { %5341 = sst [smem:[#allocation54_spill]] %s4517_s6 }
  0x2e   :  { %5344 = sst [smem:[#allocation57_spill]] %s4532_s9 }
  0x2f   :  { %s4537_s6 = sld [smem:[%s5290_s0 + %s4366_s7]]  }
  0x30   :  { %s4542_s13 = sld [smem:[%s5290_s0 + %s4367_s15]]  }
  0x31   :  { %s4552_s9 = sld [smem:[%s5290_s0 + %s4369_s28]]  }
  0x32   :  { %5343 = sst [smem:[#allocation56_spill]] %s4527_s14 }
  0x33   :  { %s4547_s14 = sld [smem:[%s5290_s0 + %s4368_s22]]  }
  0x35   :  { %5345 = sst [smem:[#allocation58_spill]] %s4537_s6 }
  0x36   :  { %5346 = sst [smem:[#allocation59_spill]] %s4542_s13 }
  0x37   :  { %5348 = sst [smem:[#allocation61_spill]] %s4552_s9 }
  0x39   :  { %5347 = sst [smem:[#allocation60_spill]] %s4547_s14 }
  0x3a   :  { %65 = vsyncpa [#allocation3], 0 }
  0x3b   :  { %66 = vsyncpa [#allocation6], 0 }
  0x3c   :  { %68 = vsyncpa [#allocation6 + $0x1], 0 }
  0x3d   :  { %69 = vsyncpa [#allocation9], 0 }
  0x3e   :  { %70 = vsyncpa [#allocation12], 0 }
  0x3f   :  { %71 = vsyncpa [#allocation15], 0 }
  0x40   :  { %72 = vsyncpa [#allocation18], 0 }
  0x41   :  { %73 = vsyncpa [#allocation21], 0 }
  0x42   :  { %74 = vsyncpa [#allocation4], 0 }
  0x43   :  { %76 = vsyncpa [#allocation4 + $0x1], 0 }
  0x44   :  { %77 = vsyncpa [#allocation25], 0 }
  0x45   :  { %79 = vsyncpa [#allocation25 + $0x1], 0  ;;  %s4554_s7 = smov 0   ;;  %s4556_s10 = smov 0  }
  0x46   :  { %s4558_s11 = smov 0   ;;  %s4560_s0 = smov 0  }
  0x47   :  { %s4562_s15 = smov 0   ;;  %s4564_s16 = smov 0  }
  0x48 LB: > { %s5349_s21 = sld [smem:[#allocation41_spill]]  ;;  %s5350_s20 = sld [smem:[#allocation48_spill]]  ;;  %s4323_s10 = sphi %s4556_s10, %s5410_s10   ;;  %s4319_s7 = sphi %s4554_s7, %s5409_s7   ;;  %s4339_s16 = sphi %s4564_s16, %s85_s16   ;;  %s4335_s15 = sphi %s4562_s15, %s5413_s15   ;;  %s4331_s0 = sphi %s4560_s0, %s5412_s0   ;;  %s4327_s11 = sphi %s4558_s11, %s5411_s11  }
  0x49   : > { %s5351_s19 = sld [smem:[#allocation45_spill]]  ;;  %s5352_s17 = sld [smem:[#allocation40_spill]] }
  0x4a   : > { %s5353_s12 = sld [smem:[#allocation47_spill]]  ;;  %s5354_s4 = sld [smem:[#allocation53_spill]] }
  0x4b   : > { %s5355_s3 = sld [smem:[#allocation42_spill]]  ;;  %s5356_s8 = sld [smem:[#allocation43_spill]] }
  0x4c   : > { %s4370_s18 = smov [#allocation7]   ;;  %s4585_s23 = sadd.s32 4294967295, %s4339_s16  }
  0x4d   : > { %s807_s22 = sshll.u32 %s4370_s18, 4  ;;  %p3186_p0 = scmp.ge.s32.totalorder %s4339_s16, 1  ;;  %s4590_s22 = int_to_ptr.vmem [resolvable:$true] %s807_s22 }
  0x4e   : > { %p5297_p1 = scmp.eq.s32.totalorder %s4585_s23, 0  ;;  %p782_p2 = scmp.lt.s32.totalorder %s4339_s16, 3 }
  0x4f   : > { %s4371_s28 = smov [#allocation8]   ;;  %s4372_s18 = smov [#allocation11]  }
  0x50   : > { %p4592_p3 = pnand %p3186_p0, %p782_p2  ;;  %s821_s1 = sshll.u32 %s4371_s28, 4  ;;  %s4605_s1 = int_to_ptr.vmem [resolvable:$true] %s821_s1 }
  0x51   : > { %s845_s13 = sshll.u32 %s4372_s18, 4  ;;  %s3803_s6 = scalar_lea.hbm %s4432_s25, 256  ;;  %s4607_s13 = int_to_ptr.vmem [resolvable:$true] %s845_s13 }
  0x52   : > { %s5357_s26 = scalar_select %p4592_p3, 1, 0 }
  0x53   : > { %p3568_p5 = pneg %p4592_p3  ;;  %p3804_p7 = scmp.ne.s32.totalorder %s4432_s25, %s3803_s6 }
  0x54   : > { %p3810_p11 = scmp.lt.u32.totalorder %s3803_s6, %s4432_s25 }
  0x55   : > { %p4601_p6 = pnand %p3568_p5, %p5297_p1 }
  0x57   : > { %p4613_p8 = pneg %p4601_p6 }
  0x59   : > { %p3806_p9 = pnand %p4613_p8, %p3804_p7 }
  0x5b   : > { %p3807_p10 = pneg %p3806_p9 }
  0x5d   : > { %p3812_p12 = pnand %p3810_p11, %p3807_p10 }
  0x5f   : > { %3815 = shalt.err (!%p3812_p12)
}
  0x60   : > { %s3816_s28 = scalar_lea.vmem %s4590_s22, 256  ;;  %p3824_p5 = scmp.lt.s32.totalorder %s4590_s22, %s4590_s22 }
  0x61   : > { %p3817_p13 = scmp.ne.s32.totalorder %s4590_s22, %s3816_s28  ;;  %p3825_p4 = scmp.lt.s32.totalorder %s3816_s28, %s3816_s28 }
  0x63   : > { %p3819_p0 = pnand %p3817_p13, %p4613_p8  ;;  %p3826_p1 = por %p3825_p4, %p3824_p5 }
  0x65   : > { %p3820_p2 = pneg %p3819_p0 }
  0x67   : > { %p3827_p3 = pnand %p3826_p1, %p3820_p2 }
  0x69   : > { %3830 = shalt.err (!%p3827_p3)
}
  0x6a   : > { %s5300_s18 = smov 64   ;;  %s5302_s6 = smov 4  }
  0x6b   : > { %3574 = dma.hbm_to_vmem [thread:$0]  (!%p4601_p6), %s4432_s25, 256, %s4590_s22, [#allocation6], %s5300_s18, %s5300_s18, %s5302_s6  }
  0x6c   : > { %s3831_s14 = scalar_lea.hbm %s4437_s29, 16 }
  0x6d   : > { %p3832_p7 = scmp.ne.s32.totalorder %s4437_s29, %s3831_s14  ;;  %p3838_p3 = scmp.lt.u32.totalorder %s3831_s14, %s4437_s29 }
  0x6f   : > { %p3834_p4 = pnand %p3832_p7, %p4613_p8 }
  0x71   : > { %p3835_p1 = pneg %p3834_p4 }
  0x73   : > { %p3840_p9 = pnand %p3838_p3, %p3835_p1 }
  0x75   : > { %3843 = shalt.err (!%p3840_p9)
}
  0x76   : > { %s3844_s28 = scalar_lea.vmem %s4605_s1, 16  ;;  %s3851_s5 = scalar_lea.vmem %s4605_s1, 32 }
  0x77   : > { %p3845_p10 = scmp.ne.s32.totalorder %s4605_s1, %s3844_s28  ;;  %p3852_p13 = scmp.lt.s32.totalorder %s4605_s1, %s4605_s1 }
  0x78   : > { %p3853_p0 = scmp.lt.s32.totalorder %s3851_s5, %s3844_s28 }
  0x79   : > { %p3847_p11 = pnand %p3845_p10, %p4613_p8 }
  0x7a   : > { %p3854_p2 = por %p3853_p0, %p3852_p13 }
  0x7b   : > { %p3848_p12 = pneg %p3847_p11 }
  0x7d   : > { %p3855_p5 = pnand %p3854_p2, %p3848_p12 }
  0x7f   : > { %3858 = shalt.err (!%p3855_p5)
}
  0x80   : > { %3577 = dma.hbm_to_vmem [thread:$0]  (!%p4601_p6), %s4437_s29, 16, %s4605_s1, [#allocation9]  }
  0x81   : > { %s3859_s14 = scalar_lea.hbm %s5356_s8, 16 }
  0x82   : > { %p3860_p7 = scmp.ne.s32.totalorder %s5356_s8, %s3859_s14  ;;  %p3866_p3 = scmp.lt.u32.totalorder %s3859_s14, %s5356_s8 }
  0x84   : > { %p3862_p4 = pnand %p3860_p7, %p4613_p8 }
  0x86   : > { %p3863_p1 = pneg %p3862_p4 }
  0x88   : > { %p3868_p9 = pnand %p3866_p3, %p3863_p1 }
  0x8a   : > { %3871 = shalt.err (!%p3868_p9)
}
  0x8b   : > { %s3872_s5 = scalar_lea.vmem %s4607_s13, 16  ;;  %s3879_s22 = scalar_lea.vmem %s4607_s13, 32 }
  0x8c   : > { %p3873_p10 = scmp.ne.s32.totalorder %s4607_s13, %s3872_s5  ;;  %p3880_p13 = scmp.lt.s32.totalorder %s4607_s13, %s4607_s13 }
  0x8d   : > { %p3881_p0 = scmp.lt.s32.totalorder %s3879_s22, %s3872_s5 }
  0x8e   : > { %p3875_p11 = pnand %p3873_p10, %p4613_p8 }
  0x8f   : > { %p3882_p2 = por %p3881_p0, %p3880_p13 }
  0x90   : > { %p3876_p12 = pneg %p3875_p11 }
  0x92   : > { %p3883_p5 = pnand %p3882_p2, %p3876_p12 }
  0x94   : > { %3886 = shalt.err (!%p3883_p5)
}
  0x95   : > { %3583 = dma.hbm_to_vmem [thread:$0]  (!%p4601_p6), %s5356_s8, 16, %s4607_s13, [#allocation12]  }
  0x96   : > { %s4375_s1 = smov [#allocation14]   ;;  %s4376_s14 = smov [#allocation17]  }
  0x97   : > { %s870_s28 = sshll.u32 %s4375_s1, 4  ;;  %s895_s18 = sshll.u32 %s4376_s14, 4  ;;  %s871_s28 = int_to_ptr.vmem [resolvable:$true] %s870_s28  ;;  %s896_s18 = int_to_ptr.vmem [resolvable:$true] %s895_s18 }
  0x98   : > { %s3887_s6 = scalar_lea.hbm %s4462_s24, 16 }
  0x99   : > { %p3888_p7 = scmp.ne.s32.totalorder %s4462_s24, %s3887_s6  ;;  %p3894_p3 = scmp.lt.u32.totalorder %s3887_s6, %s4462_s24 }
  0x9b   : > { %p3890_p4 = pnand %p3888_p7, %p4613_p8 }
  0x9d   : > { %p3891_p1 = pneg %p3890_p4 }
  0x9f   : > { %p3896_p9 = pnand %p3894_p3, %p3891_p1 }
  0xa1   : > { %3899 = shalt.err (!%p3896_p9)
}
  0xa2   : > { %s3900_s5 = scalar_lea.vmem %s871_s28, 16  ;;  %s3907_s13 = scalar_lea.vmem %s871_s28, 32 }
  0xa3   : > { %p3901_p10 = scmp.ne.s32.totalorder %s871_s28, %s3900_s5  ;;  %p3908_p13 = scmp.lt.s32.totalorder %s871_s28, %s871_s28 }
  0xa4   : > { %p3909_p0 = scmp.lt.s32.totalorder %s3907_s13, %s3900_s5 }
  0xa5   : > { %p3903_p11 = pnand %p3901_p10, %p4613_p8 }
  0xa6   : > { %p3910_p2 = por %p3909_p0, %p3908_p13 }
  0xa7   : > { %p3904_p12 = pneg %p3903_p11 }
  0xa9   : > { %p3911_p5 = pnand %p3910_p2, %p3904_p12 }
  0xab   : > { %3914 = shalt.err (!%p3911_p5)
}
  0xac   : > { %3589 = dma.hbm_to_vmem [thread:$0]  (!%p4601_p6), %s4462_s24, 16, %s871_s28, [#allocation15]  }
  0xad   : > { %s3915_s6 = scalar_lea.hbm %s5353_s12, 16 }
  0xae   : > { %p3916_p7 = scmp.ne.s32.totalorder %s5353_s12, %s3915_s6  ;;  %p3922_p3 = scmp.lt.u32.totalorder %s3915_s6, %s5353_s12 }
  0xb0   : > { %p3918_p4 = pnand %p3916_p7, %p4613_p8 }
  0xb2   : > { %p3919_p1 = pneg %p3918_p4 }
  0xb4   : > { %p3924_p9 = pnand %p3922_p3, %p3919_p1 }
  0xb6   : > { %3927 = shalt.err (!%p3924_p9)
}
  0xb7   : > { %s3928_s22 = scalar_lea.vmem %s896_s18, 16  ;;  %s3935_s1 = scalar_lea.vmem %s896_s18, 32 }
  0xb8   : > { %p3929_p10 = scmp.ne.s32.totalorder %s896_s18, %s3928_s22  ;;  %p3936_p13 = scmp.lt.s32.totalorder %s896_s18, %s896_s18 }
  0xb9   : > { %p3937_p0 = scmp.lt.s32.totalorder %s3935_s1, %s3928_s22 }
  0xba   : > { %p3931_p11 = pnand %p3929_p10, %p4613_p8 }
  0xbb   : > { %p3938_p2 = por %p3937_p0, %p3936_p13 }
  0xbc   : > { %p3932_p12 = pneg %p3931_p11 }
  0xbe   : > { %p3939_p5 = pnand %p3938_p2, %p3932_p12 }
  0xc0   : > { %3942 = shalt.err (!%p3939_p5)
}
  0xc1   : > { %3595 = dma.hbm_to_vmem [thread:$0]  (!%p4601_p6), %s5353_s12, 16, %s896_s18, [#allocation18]  }
  0xc2   : > { %s4377_s28 = smov [#allocation20]   ;;  %s3943_s5 = scalar_lea.hbm %s4487_s27, 16 }
  0xc3   : > { %s919_s14 = sshll.u32 %s4377_s28, 4  ;;  %p3944_p7 = scmp.ne.s32.totalorder %s4487_s27, %s3943_s5  ;;  %s920_s14 = int_to_ptr.vmem [resolvable:$true] %s919_s14 }
  0xc4   : > { %p3950_p3 = scmp.lt.u32.totalorder %s3943_s5, %s4487_s27 }
  0xc5   : > { %p3946_p4 = pnand %p3944_p7, %p4613_p8 }
  0xc7   : > { %p3947_p1 = pneg %p3946_p4 }
  0xc9   : > { %p3952_p9 = pnand %p3950_p3, %p3947_p1 }
  0xcb   : > { %3955 = shalt.err (!%p3952_p9)
}
  0xcc   : > { %s3956_s13 = scalar_lea.vmem %s920_s14, 16  ;;  %s3963_s6 = scalar_lea.vmem %s920_s14, 32 }
  0xcd   : > { %p3957_p10 = scmp.ne.s32.totalorder %s920_s14, %s3956_s13  ;;  %p3964_p13 = scmp.lt.s32.totalorder %s920_s14, %s920_s14 }
  0xce   : > { %p3965_p0 = scmp.lt.s32.totalorder %s3963_s6, %s3956_s13 }
  0xcf   : > { %p3959_p11 = pnand %p3957_p10, %p4613_p8 }
  0xd0   : > { %p3966_p2 = por %p3965_p0, %p3964_p13 }
  0xd1   : > { %p3960_p12 = pneg %p3959_p11 }
  0xd3   : > { %p3967_p5 = pnand %p3966_p2, %p3960_p12 }
  0xd5   : > { %3970 = shalt.err (!%p3967_p5)
}
  0xd6   : > { %3601 = dma.hbm_to_vmem [thread:$0]  (!%p4601_p6), %s4487_s27, 16, %s920_s14, [#allocation21]  }
  0xd7   : > { %s4378_s18 = smov [#allocation2]   ;;  %s4379_s1 = smov [#allocation10]  }
  0xd8   : > { %s797_s22 = sshll.u32 %s4378_s18, 4  ;;  %s831_s28 = sshll.u32 %s4379_s1, 4  ;;  %s798_s22 = int_to_ptr.vmem [resolvable:$true] %s797_s22  ;;  %s4695_s28 = int_to_ptr.vmem [resolvable:$true] %s831_s28 }
  0xd9   : > { %s3971_s5 = scalar_lea.hbm %s5352_s17, 64 }
  0xda   : > { %p3972_p7 = scmp.ne.s32.totalorder %s5352_s17, %s3971_s5  ;;  %p3978_p3 = scmp.lt.u32.totalorder %s3971_s5, %s5352_s17 }
  0xdc   : > { %p3974_p4 = pnand %p3972_p7, %p4613_p8 }
  0xde   : > { %p3975_p1 = pneg %p3974_p4 }
  0xe0   : > { %p3980_p9 = pnand %p3978_p3, %p3975_p1 }
  0xe2   : > { %3983 = shalt.err (!%p3980_p9)
}
  0xe3   : > { %s3984_s13 = scalar_lea.vmem %s798_s22, 64  ;;  %p3992_p13 = scmp.lt.s32.totalorder %s798_s22, %s798_s22 }
  0xe4   : > { %p3985_p10 = scmp.ne.s32.totalorder %s798_s22, %s3984_s13  ;;  %p3993_p0 = scmp.lt.s32.totalorder %s3984_s13, %s3984_s13 }
  0xe6   : > { %p3987_p11 = pnand %p3985_p10, %p4613_p8  ;;  %p3994_p2 = por %p3993_p0, %p3992_p13 }
  0xe8   : > { %p3988_p12 = pneg %p3987_p11 }
  0xea   : > { %p3995_p5 = pnand %p3994_p2, %p3988_p12 }
  0xec   : > { %3998 = shalt.err (!%p3995_p5)
}
  0xed   : > { %3571 = dma.hbm_to_vmem [thread:$0]  (!%p4601_p6), %s5352_s17, 64, %s798_s22, [#allocation3]  }
  0xee   : > { %s3999_s14 = scalar_lea.hbm %s5355_s3, 256 }
  0xef   : > { %p4000_p7 = scmp.ne.s32.totalorder %s5355_s3, %s3999_s14  ;;  %p4006_p3 = scmp.lt.u32.totalorder %s3999_s14, %s5355_s3 }
  0xf1   : > { %p4002_p4 = pnand %p4000_p7, %p4613_p8 }
  0xf3   : > { %p4003_p1 = pneg %p4002_p4 }
  0xf5   : > { %p4008_p9 = pnand %p4006_p3, %p4003_p1 }
  0xf7   : > { %4011 = shalt.err (!%p4008_p9)
}
  0xf8   : > { %s4012_s6 = scalar_lea.vmem %s4695_s28, 256  ;;  %p4020_p13 = scmp.lt.s32.totalorder %s4695_s28, %s4695_s28 }
  0xf9   : > { %p4013_p10 = scmp.ne.s32.totalorder %s4695_s28, %s4012_s6  ;;  %p4021_p0 = scmp.lt.s32.totalorder %s4012_s6, %s4012_s6 }
  0xfb   : > { %p4015_p11 = pnand %p4013_p10, %p4613_p8  ;;  %p4022_p2 = por %p4021_p0, %p4020_p13 }
  0xfd   : > { %p4016_p12 = pneg %p4015_p11 }
  0xff   : > { %p4023_p5 = pnand %p4022_p2, %p4016_p12 }
 0x101   : > { %4026 = shalt.err (!%p4023_p5)
}
 0x102   : > { %s5360_s18 = smov 4   ;;  %s5361_s22 = smov 64  }
 0x103   : > { %3580 = dma.hbm_to_vmem [thread:$0]  (!%p4601_p6), %s5355_s3, 256, %s4695_s28, [#allocation9], %s5361_s22, %s5361_s22, %s5360_s18  }
 0x104   : > { %s4380_s1 = smov [#allocation13]   ;;  %s4381_s13 = smov [#allocation16]  }
 0x105   : > { %s859_s5 = sshll.u32 %s4380_s1, 4  ;;  %s881_s14 = sshll.u32 %s4381_s13, 4  ;;  %s860_s5 = int_to_ptr.vmem [resolvable:$true] %s859_s5  ;;  %s4725_s14 = int_to_ptr.vmem [resolvable:$true] %s881_s14 }
 0x106   : > { %s4027_s6 = scalar_lea.hbm %s5351_s19, 16 }
 0x107   : > { %p4028_p7 = scmp.ne.s32.totalorder %s5351_s19, %s4027_s6  ;;  %p4034_p3 = scmp.lt.u32.totalorder %s4027_s6, %s5351_s19 }
 0x109   : > { %p4030_p4 = pnand %p4028_p7, %p4613_p8 }
 0x10b   : > { %p4031_p1 = pneg %p4030_p4 }
 0x10d   : > { %p4036_p9 = pnand %p4034_p3, %p4031_p1 }
 0x10f   : > { %4039 = shalt.err (!%p4036_p9)
}
 0x110   : > { %s4040_s8 = scalar_lea.vmem %s860_s5, 16  ;;  %s4047_s28 = scalar_lea.vmem %s860_s5, 32 }
 0x111   : > { %p4041_p10 = scmp.ne.s32.totalorder %s860_s5, %s4040_s8  ;;  %p4048_p13 = scmp.lt.s32.totalorder %s860_s5, %s860_s5 }
 0x112   : > { %p4049_p0 = scmp.lt.s32.totalorder %s4047_s28, %s4040_s8 }
 0x113   : > { %p4043_p11 = pnand %p4041_p10, %p4613_p8 }
 0x114   : > { %p4050_p2 = por %p4049_p0, %p4048_p13 }
 0x115   : > { %p4044_p12 = pneg %p4043_p11 }
 0x117   : > { %p4051_p5 = pnand %p4050_p2, %p4044_p12 }
 0x119   : > { %4054 = shalt.err (!%p4051_p5)
}
 0x11a   : > { %3586 = dma.hbm_to_vmem [thread:$0]  (!%p4601_p6), %s5351_s19, 16, %s860_s5, [#allocation12]  }
 0x11b   : > { %s4055_s1 = scalar_lea.hbm %s4467_s30, 16 }
 0x11c   : > { %p4056_p7 = scmp.ne.s32.totalorder %s4467_s30, %s4055_s1  ;;  %p4062_p3 = scmp.lt.u32.totalorder %s4055_s1, %s4467_s30 }
 0x11e   : > { %p4058_p4 = pnand %p4056_p7, %p4613_p8 }
 0x120   : > { %p4059_p1 = pneg %p4058_p4 }
 0x122   : > { %p4064_p9 = pnand %p4062_p3, %p4059_p1 }
 0x124   : > { %4067 = shalt.err (!%p4064_p9)
}
 0x125   : > { %s4068_s8 = scalar_lea.vmem %s4725_s14, 16  ;;  %s4075_s13 = scalar_lea.vmem %s4725_s14, 32 }
 0x126   : > { %p4069_p10 = scmp.ne.s32.totalorder %s4725_s14, %s4068_s8  ;;  %p4076_p13 = scmp.lt.s32.totalorder %s4725_s14, %s4725_s14 }
 0x127   : > { %p4077_p0 = scmp.lt.s32.totalorder %s4075_s13, %s4068_s8 }
 0x128   : > { %p4071_p11 = pnand %p4069_p10, %p4613_p8 }
 0x129   : > { %p4078_p2 = por %p4077_p0, %p4076_p13 }
 0x12a   : > { %p4072_p12 = pneg %p4071_p11 }
 0x12c   : > { %p4079_p5 = pnand %p4078_p2, %p4072_p12 }
 0x12e   : > { %4082 = shalt.err (!%p4079_p5)
}
 0x12f   : > { %3592 = dma.hbm_to_vmem [thread:$0]  (!%p4601_p6), %s4467_s30, 16, %s4725_s14, [#allocation15]  }
 0x130   : > { %s4382_s5 = smov [#allocation19]   ;;  %s4383_s28 = smov [#allocation22]  }
 0x131   : > { %s905_s6 = sshll.u32 %s4382_s5, 4  ;;  %s941_s1 = sshll.u32 %s4383_s28, 4  ;;  %s906_s6 = int_to_ptr.vmem [resolvable:$true] %s905_s6  ;;  %s4753_s1 = int_to_ptr.vmem [resolvable:$true] %s941_s1 }
 0x132   : > { %s4083_s8 = scalar_lea.hbm %s5350_s20, 256 }
 0x133   : > { %p4084_p7 = scmp.ne.s32.totalorder %s5350_s20, %s4083_s8  ;;  %p4090_p3 = scmp.lt.u32.totalorder %s4083_s8, %s5350_s20 }
 0x135   : > { %p4086_p4 = pnand %p4084_p7, %p4613_p8 }
 0x137   : > { %p4087_p1 = pneg %p4086_p4 }
 0x139   : > { %p4092_p9 = pnand %p4090_p3, %p4087_p1 }
 0x13b   : > { %4095 = shalt.err (!%p4092_p9)
}
 0x13c   : > { %s4096_s13 = scalar_lea.vmem %s906_s6, 256  ;;  %p4104_p13 = scmp.lt.s32.totalorder %s906_s6, %s906_s6 }
 0x13d   : > { %p4097_p10 = scmp.ne.s32.totalorder %s906_s6, %s4096_s13  ;;  %p4105_p0 = scmp.lt.s32.totalorder %s4096_s13, %s4096_s13 }
 0x13f   : > { %p4099_p11 = pnand %p4097_p10, %p4613_p8  ;;  %p4106_p2 = por %p4105_p0, %p4104_p13 }
 0x141   : > { %p4100_p12 = pneg %p4099_p11 }
 0x143   : > { %p4107_p5 = pnand %p4106_p2, %p4100_p12 }
 0x145   : > { %4110 = shalt.err (!%p4107_p5)
}
 0x146   : > { %3598 = dma.hbm_to_vmem [thread:$0]  (!%p4601_p6), %s5350_s20, 256, %s906_s6, [#allocation18], %s5361_s22, %s5361_s22, %s5360_s18  }
 0x147   : > { %s4111_s14 = scalar_lea.hbm %s5354_s4, 256 }
 0x148   : > { %p4112_p7 = scmp.ne.s32.totalorder %s5354_s4, %s4111_s14  ;;  %p4118_p3 = scmp.lt.u32.totalorder %s4111_s14, %s5354_s4 }
 0x14a   : > { %p4114_p4 = pnand %p4112_p7, %p4613_p8 }
 0x14c   : > { %p4115_p1 = pneg %p4114_p4 }
 0x14e   : > { %p4120_p9 = pnand %p4118_p3, %p4115_p1 }
 0x150   : > { %4123 = shalt.err (!%p4120_p9)
}
 0x151   : > { %s4124_s5 = scalar_lea.vmem %s4753_s1, 256  ;;  %p4132_p13 = scmp.lt.s32.totalorder %s4753_s1, %s4753_s1 }
 0x152   : > { %p4125_p10 = scmp.ne.s32.totalorder %s4753_s1, %s4124_s5  ;;  %p4133_p0 = scmp.lt.s32.totalorder %s4124_s5, %s4124_s5 }
 0x154   : > { %p4127_p11 = pnand %p4125_p10, %p4613_p8  ;;  %p4134_p2 = por %p4133_p0, %p4132_p13 }
 0x156   : > { %p4128_p12 = pneg %p4127_p11 }
 0x158   : > { %p4135_p5 = pnand %p4134_p2, %p4128_p12 }
 0x15a   : > { %4138 = shalt.err (!%p4135_p5)
}
 0x15b   : > { %3604 = dma.hbm_to_vmem [thread:$0]  (!%p4601_p6), %s5354_s4, 256, %s4753_s1, [#allocation21], %s5361_s22, %s5361_s22, %s5360_s18  }
 0x15c   : > { %s5307_s9 = sadd.s32 4294967294, %s4339_s16   ;;  %s97_s2 = sadd.s32 1, %s4335_s15 }
 0x15d   : > { %p99_p8 = scmp.ge.s32.totalorder %s97_s2, 2  ;;  %s212_s6 = sadd.s32 1, %s4327_s11 }
 0x15e   : > { %p219_p7 = scmp.ne.s32.totalorder %s4327_s11, %s4323_s10  ;;  %p220_p4 = scmp.eq.s32.totalorder %s4339_s16, 0 }
 0x15f   : > { %s5415_s2 = smov (%p99_p8, %s97_s2), 0  ;;  %p225_p6 = scmp.ne.s32.totalorder %s4323_s10, %s4319_s7 }
 0x160   : > { %p4794_p1 = por %p220_p4, %p219_p7  ;;  %s207_s18 = ssub.s32 %s4335_s15, %s5415_s2 }
 0x161   : > { %p713_p3 = scmp.eq.s32.totalorder %s4585_s23, 1  ;;  %p210_p9 = scmp.eq.s32.totalorder %s207_s18, 0 }
 0x162   : > { %p5363_p10 = scmp.eq.s32.totalorder %s4585_s23, 0  ;;  %p719_p13 = scmp.eq.s32.totalorder %s5307_s9, 1 }
 0x163   : > { %p4809_p12 = por %p713_p3, %p219_p7  ;;  %p3631_p2 = scmp.lt.s32.totalorder %s4339_s16, 2 }
 0x164   : > { %p4805_p11 = por %p5363_p10, %p225_p6  ;;  %p4818_p0 = por %p719_p13, %p225_p6 }
 0x165   : > { %s5365_s1 = scalar_select %p4809_p12, 1, 0 }
 0x166   : > { %s5364_s22 = scalar_select %p4805_p11, 1, 0 }
 0x167   : > { %s4816_s8 = scalar_select %p210_p9, %s4327_s11, %s212_s6  }
 0x168   : > { %s5366_s13 = scalar_select %p4818_p0, 1, 0 }
 0x169   : > { %s994_s14 = sand.u32 1, %s4339_s16   ;;  %s996_s5 = sand.u32 1, %s4327_s11  }
 0x16a   : > { %s3200_s18 = sshll.u32 %s996_s5, 2  ;;  %s3201_s3 = sshll.u32 %s4335_s15, 6 }
 0x16b   : > { %s4827_s4 = scalar_lea.hbm %s5349_s21, %s3201_s3  ;;  %s998_s9 = scalar_lea.vmem [#allocation5], %s3200_s18 }
 0x16c   : > { %s1006_s6 = sshll.u32 %s998_s9, 4  ;;  %p4833_p5 = pnand %p3631_p2, %p4794_p1  ;;  %s4829_s6 = int_to_ptr.vmem [resolvable:$true] %s1006_s6 }
 0x16d   : > { %s995_s17 = scalar_lea.sflag [#allocation6], %s994_s14  ;;  %s4139_s5 = scalar_lea.hbm %s4827_s4, 64 }
 0x16e   : > { %p4140_p8 = scmp.ne.s32.totalorder %s4827_s4, %s4139_s5  ;;  %p4141_p7 = pneg %p4833_p5 }
 0x16f   : > { %s4144_s3 = scalar_lea.hbm %s5349_s21, 128  ;;  %p4145_p3 = scmp.lt.u32.totalorder %s4827_s4, %s5349_s21 }
 0x170   : > { %p4142_p4 = pnand %p4141_p7, %p4140_p8  ;;  %p4146_p9 = scmp.lt.u32.totalorder %s4144_s3, %s4139_s5 }
 0x171   : > { %p4148_p13 = scmp.lt.u32.totalorder %s4139_s5, %s4827_s4 }
 0x172   : > { %p4143_p6 = pneg %p4142_p4  ;;  %p4147_p10 = por %p4146_p9, %p4145_p3 }
 0x174   : > { %p4149_p1 = por %p4148_p13, %p4147_p10 }
 0x176   : > { %p4150_p2 = pnand %p4149_p1, %p4143_p6 }
 0x178   : > { %4153 = shalt.err (!%p4150_p2)
}
 0x179   : > { %s4154_s9 = scalar_lea.vmem %s4829_s6, 64  ;;  %s4384_s28 = smov [#allocation5]  }
 0x17a   : > { %p4155_p0 = scmp.ne.s32.totalorder %s4829_s6, %s4154_s9  ;;  %s4159_s14 = sshll.u32 %s4384_s28, 4  ;;  %s4160_s14 = int_to_ptr.vmem [resolvable:$false] %s4159_s14 }
 0x17b   : > { %s4161_s18 = scalar_lea.vmem %s4160_s14, 128  ;;  %p4162_p8 = scmp.lt.s32.totalorder %s4829_s6, %s4160_s14 }
 0x17c   : > { %p4157_p12 = pnand %p4155_p0, %p4141_p7  ;;  %p4163_p4 = scmp.lt.s32.totalorder %s4161_s18, %s4154_s9 }
 0x17e   : > { %p4158_p11 = pneg %p4157_p12  ;;  %p4164_p3 = por %p4163_p4, %p4162_p8 }
 0x180   : > { %p4165_p9 = pnand %p4164_p3, %p4158_p11 }
 0x182   : > { %4168 = shalt.err (!%p4165_p9)
}
 0x183   : > { %3608 = dma.hbm_to_vmem [thread:$0]  (!%p4833_p5), %s4827_s4, 64, %s4829_s6, %s995_s17  }
 0x184   : > { %p5368_p6 = scmp.ne.s32.totalorder %s5357_s26, 0 }
 0x185   : > { %p5369_p0 = scmp.eq.s32.totalorder (!%p5368_p6), %s4585_s23, 0 }
 0x186   : > { %1015 = sbr.rel (%p5368_p6) target bundleno = 4662 (0x1236), region = 128 }
 0x18d   : > { %4278 = dma.done.wait (%p5369_p0), [#allocation3], 64   ;;  %p5370_p12 = pmov %p5369_p0 }
 0x18e   : > { %s5312_s5 = sand.u32 1, %s4585_s23   ;;  %s4866_s3 = sand.u32 1, %s4323_s10  }
 0x18f   : > { %4280 = vsyncadd (%p5370_p12), [#allocation3], 4294967232  ;;  %s3204_s12 = sshll.u32 %s4866_s3, 2  ;;  %s1022_s17 = scalar_lea.sflag [#allocation6], %s5312_s5 }
 0x190   : > { %s4871_s4 = scalar_lea.vmem [#allocation5], %s3204_s12  ;;  %p5371_p11 = scmp.ne.s32.totalorder %s5364_s22, 0 }
 0x192   : > { %4282 = dma.done.wait (%p5371_p11), %s1022_s17, 64  }
 0x193   : > { %4284 = vsyncadd (%p5371_p11), %s1022_s17, 4294967232  ;;  %p5372_p5 = pmov %p5369_p0 }
 0x194   : > { %p5373_p7 = pmov %p5369_p0 }
 0x195   : > { %4286 = dma.done.wait (%p5372_p5), [#allocation6], 256  }
 0x196   : > { %4288 = vsyncadd (%p5373_p7), [#allocation6], 4294967040  ;;  %p5374_p10 = pmov %p5369_p0 }
 0x197   : > { %p5375_p13 = pmov %p5369_p0 }
 0x198   : > { %4290 = dma.done.wait (%p5374_p10), [#allocation9], 272  }
 0x199   : > { %4292 = vsyncadd (%p5375_p13), [#allocation9], 4294967024  ;;  %p5376_p1 = pmov %p5369_p0 }
 0x19a   : > { %p5377_p2 = pmov %p5369_p0 }
 0x19b   : > { %4294 = dma.done.wait (%p5376_p1), [#allocation12], 32  }
 0x19c   : > { %4296 = vsyncadd (%p5377_p2), [#allocation12], 4294967264  ;;  %p5378_p8 = pmov %p5369_p0 }
 0x19d   : > { %p5379_p4 = pmov %p5369_p0 }
 0x19e   : > { %4298 = dma.done.wait (%p5378_p8), [#allocation15], 32  }
 0x19f   : > { %4300 = vsyncadd (%p5379_p4), [#allocation15], 4294967264  ;;  %p5380_p3 = pmov %p5369_p0 }
 0x1a0   : > { %p5381_p9 = pmov %p5369_p0 }
 0x1a1   : > { %4302 = dma.done.wait (%p5380_p3), [#allocation18], 272  }
 0x1a2   : > { %4304 = vsyncadd (%p5381_p9), [#allocation18], 4294967024  ;;  %p5382_p6 = pmov %p5369_p0 }
 0x1a4   : > { %4306 = dma.done.wait (%p5382_p6), [#allocation21], 272  }
 0x1a5   : > { %4308 = vsyncadd (%p5369_p0), [#allocation21], 4294967024  ;;  %s5383_s26 = sld [smem:[#allocation37_spill]]  ;;  %s5384_s22 = sld [smem:[#allocation38_spill]]  ;;  %v4385_v0 = vmov 0.0   ;;  %vm4386_vm0 = vmmov 0  }
 0x1a6   : > { %p1169_p12 = scmp.lt.s32.totalorder %s4331_s0, 1  ;;  %3348 = vmatprep.subr.bf16.mxu0 %v4385_v0  ;;  %3356 = vmatprep.subr.bf16.mxu1 %v4385_v0  ;;  %v3747_v1 = vld [vmem:[#allocation7] sm:$0xff]   ;;  %v3748_v2 = vld [vmem:[#allocation10] sm:$0xff]   ;;  %v3749_v3 = vld [vmem:[#allocation7 + $0x8] sm:$0xff]   ;;  %vm1214_vm1 = vcmask 261120   ;;  %s4387_s18 = smov 120  }
 0x1a7   : > { %3352 = vmatprep.mubr.msk.bf16.mxu0 %vm4386_vm0, %v4385_v0  ;;  %3360 = vmatprep.mubr.msk.bf16.mxu1 %vm4386_vm0, %v4385_v0  ;;  %v3750_v4 = vld [vmem:[#allocation10 + $0x8] sm:$0xff]   ;;  %v3222_v9 = vld [vmem:[#allocation8] ss:$0 sm:$0xff]  ;;  %v3226_v10 = vld [vmem:[#allocation11] ss:$0 sm:$0xff]  ;;  %vm1359_vm2 = vcmask 64512  }
 0x1a8   : > { %s1170_s6 = scalar_select %p1169_p12, %s4331_s0, 1  ;;  %3349 = vmatpush3.bf16.msra.mxu0 %v3747_v1  ;;  %3357 = vmatpush3.bf16.msra.mxu1 %v3748_v2  ;;  %v1324_v39 = vld [vmem:[#allocation2] sm:$0xf]  ;;  %vm1598_vm3 = vcmask 1043456   ;;  %vm1899_vm4 = vcmask 60416   ;;  %vm1802_vm5 = vcmask 130048  }
 0x1a9   : > { %3350 = vmatprep.subr.bf16.mxu0 %v4385_v0  ;;  %3358 = vmatprep.subr.bf16.mxu1 %v4385_v0  ;;  %s4388_s12 = smov 104   ;;  %s4389_s17 = smov 112   ;;  %v1358_v40 = vunpack.c.l.bf16 %v1324_v39  ;;  %vm1804_vm6 = vcmask 195584   ;;  %vm2719_vm7 = vcmask 523264  }
 0x1aa   : > { %s4909_s9 = sshll.u32 %s1170_s6, 3  ;;  %s5315_s5 = smov 16  }
 0x1ab   : > { %s1175_s28 = scalar_lea.vmem %s5383_s26, %s4909_s9  ;;  %s1179_s14 = scalar_lea.vmem %s5384_s22, %s4909_s9 }
 0x1ac   : > { %v4917_v5 = vld [vmem:[%s1175_s28] sm:$0xff]  ;;  %3351 = vmatpush3.bf16.msra.mxu0 %v3749_v3  ;;  %3359 = vmatpush3.bf16.msra.mxu1 %v3750_v4  ;;  %s4390_s26 = smov 96   ;;  %s5313_s22 = sshll.u32 %s4866_s3, 4 }
 0x1ad   : > { %v1187_v6 = vld [vmem:[%s1179_s14] sm:$0xff]  ;;  %v1186_v7 = vpack.c.bf16 %v4917_v5, %v4917_v5  ;;  %3364 = vmatprep.subr.bf16.mxu0 %v4385_v0  ;;  %3370 = vmatprep.subr.bf16.mxu1 %v4385_v0  ;;  %s4989_s6 = scalar_lea.vmem [#allocation24], %s5313_s22  ;;  %s5385_s28 = sld [smem:[#allocation44_spill]] }
 0x1ae   : > { %v1188_v8 = vpack.c.bf16 %v1187_v6, %v1187_v6  ;;  %s5316_s14 = smov 8   ;;  %s5314_s22 = smov 24  }
 0x1af   : > { %3353 = vmatmul.mubr.msk.bf16.vlgmr.msra.gmra.mrb[0].mxu0 %vm1214_vm1, %v1186_v7  ;;  %p5401_p5 = scmp.ne.s32.totalorder %s5365_s1, 0 }
 0x1b0   : > { %3361 = vmatmul.mubr.msk.bf16.vlgmr.msra.gmra.mrb[0].mxu1 %vm1214_vm1, %v1188_v8  ;;  %3366 = vmatprep.mubr.msk.bf16.mxu0 %vm4386_vm0, %v4385_v0 }
 0x1b1   : > { %3372 = vmatprep.mubr.msk.bf16.mxu1 %vm4386_vm0, %v4385_v0 }
 0x282   : > { %v1252_v11 = vpop.f32.mrb[0].mxu0 }
 0x283   : > { %v1253_v12 = vadd.f32 %v3222_v9, %v1252_v11  ;;  %v1318_v13 = vpop.f32.mrb[0].mxu1  ;;  %v3354_v14 = vpop.f32.mrb[1].mxu0 }
 0x284   : > { %v1319_v15 = vadd.f32 %v3226_v10, %v1318_v13  ;;  %v3362_v16 = vpop.f32.mrb[1].mxu1  ;;  %v1255_v17 = vpop.f32.mrb[2].mxu0 }
 0x285   : > { %v1321_v18 = vpop.f32.mrb[2].mxu1  ;;  %1331 = vrot.lane.b32.xlu1 %v1253_v12, %s4387_s18  ;;  %v3355_v19 = vpop.f32.mrb[3].mxu0  ;;  %v1340_v23 = vpack.c.bf16 %v1253_v12, %v1253_v12 }
 0x286   : > { %1345 = vrot.lane.b32.xlu0 %v1319_v15, %s4387_s18  ;;  %v3363_v20 = vpop.f32.mrb[3].mxu1  ;;  %v4931_v21 = vpack.c.bf16 %v1319_v15, %v1319_v15 }
 0x288   : > { %v1364_v22 = vsel %vm1359_vm2, %v4931_v21, 0 }
 0x289   : > { %3365 = vmatpush3.bf16.xpose.msra.mxu0 %v1364_v22  ;;  %1351 = vrot.lane.b32.xlu1 %v1319_v15, %s4388_s12 }
 0x28a   : > { %1348 = vrot.lane.b32.xlu0 %v1319_v15, %s4389_s17  ;;  %3376 = vmatprep.subr.bf16.mxu0 %v4385_v0 }
 0x28d   : > { %1337 = vrot.lane.b32.xlu1 %v1253_v12, %s4388_s12 }
 0x28e   : > { %1334 = vrot.lane.b32.xlu0 %v1253_v12, %s4389_s17 }
 0x290   : > { %3367 = vmatmul.mubr.msk.bf16.vlgmr.msra.gmra.mrb[4].mxu0 %vm1359_vm2, %v1340_v23 }
 0x291   : > { %3378 = vmatprep.mubr.msk.bf16.mxu0 %vm4386_vm0, %v4385_v0 }
 0x2f7   : > { %v1332_v24 = vpop.permute.xlu1 %1331 }
 0x2f8   : > { %v1346_v25 = vpop.permute.xlu0 %1345  ;;  %v1341_v33 = vpack.c.bf16 %v1332_v24, %v1332_v24 }
 0x2f9   : > { %v4943_v26 = vpack.c.bf16 %v1346_v25, %v1346_v25 }
 0x2fb   : > { %v1410_v27 = vsel %vm1359_vm2, %v4943_v26, 0  ;;  %v1352_v29 = vpop.permute.xlu1 %1351 }
 0x2fc   : > { %3371 = vmatpush3.bf16.xpose.msra.mxu1 %v1410_v27  ;;  %v1349_v28 = vpop.permute.xlu0 %1348  ;;  %v4952_v32 = vpack.c.bf16 %v1352_v29, %v1352_v29 }
 0x2fd   : > { %v4947_v30 = vpack.c.bf16 %v1349_v28, %v1349_v28  ;;  %3382 = vmatprep.subr.bf16.mxu1 %v4385_v0 }
 0x2fe   : > { %v1502_v35 = vsel %vm1359_vm2, %v4952_v32, 0 }
 0x2ff   : > { %v1456_v31 = vsel %vm1359_vm2, %v4947_v30, 0  ;;  %v1338_v37 = vpop.permute.xlu1 %1337 }
 0x300   : > { %3377 = vmatpush3.bf16.xpose.msra.mxu0 %v1456_v31  ;;  %v1335_v34 = vpop.permute.xlu0 %1334  ;;  %v1343_v38 = vpack.c.bf16 %v1338_v37, %v1338_v37 }
 0x301   : > { %3388 = vmatprep.subr.bf16.mxu0 %v4385_v0  ;;  %v1342_v36 = vpack.c.bf16 %v1335_v34, %v1335_v34 }
 0x303   : > { %3373 = vmatmul.mubr.msk.bf16.vlgmr.msra.gmra.mrb[4].mxu1 %vm1359_vm2, %v1341_v33 }
 0x304   : > { %3383 = vmatpush3.bf16.xpose.msra.mxu1 %v1502_v35  ;;  %3384 = vmatprep.mubr.msk.bf16.mxu1 %vm4386_vm0, %v4385_v0 }
 0x305   : > { %3394 = vmatprep.subr.bf16.mxu1 %v4385_v0 }
 0x307   : > { %3379 = vmatmul.mubr.msk.bf16.vlgmr.msra.gmra.mrb[8].mxu0 %vm1359_vm2, %v1342_v36 }
 0x308   : > { %3390 = vmatprep.mubr.msk.bf16.mxu0 %vm4386_vm0, %v4385_v0 }
 0x30b   : > { %3385 = vmatmul.mubr.msk.bf16.vlgmr.msra.gmra.mrb[8].mxu1 %vm1359_vm2, %v1343_v38 }
 0x30c   : > { %3396 = vmatprep.mubr.msk.bf16.mxu1 %vm4386_vm0, %v4385_v0 }
 0x363   : > { %v1400_v41 = vpop.f32.mrb[4].mxu0 }
 0x364   : > { %v1401_v42 = vadd.f32 %v1400_v41, %v1358_v40  ;;  %v3368_v43 = vpop.f32.mrb[5].mxu0 }
 0x365   : > { %v1403_v44 = vpop.f32.mrb[6].mxu0 }
 0x366   : > { %v3369_v45 = vpop.f32.mrb[7].mxu0  ;;  %v1544_v46 = vsel %vm1359_vm2, %v1401_v42, -inf }
 0x367   : > { %1545 = vmax.xlane.f32.xlu0 %v1544_v46 }
 0x3d6   : > { %v1446_v47 = vpop.f32.mrb[4].mxu1 }
 0x3d7   : > { %v1447_v48 = vadd.f32 %v1446_v47, %v1358_v40  ;;  %v3374_v49 = vpop.f32.mrb[5].mxu1 }
 0x3d8   : > { %v1449_v50 = vpop.f32.mrb[6].mxu1 }
 0x3d9   : > { %v3375_v51 = vpop.f32.mrb[7].mxu1  ;;  %v1547_v52 = vsel %vm1359_vm2, %v1447_v48, -inf }
 0x3da   : > { %1548 = vmax.xlane.f32.xlu1 %v1547_v52  ;;  %v1492_v53 = vpop.f32.mrb[8].mxu0  ;;  %v3751_v51 = vld [vmem:[%s5385_s28] sm:$0xff]   ;;  %v3752_v52 = vld [vmem:[%s5385_s28 + $0x8] sm:$0xff]  }
 0x3db   : > { %v1493_v54 = vadd.f32 %v1492_v53, %v1358_v40  ;;  %v3380_v55 = vpop.f32.mrb[9].mxu0 }
 0x3dc   : > { %v1495_v56 = vpop.f32.mrb[10].mxu0 }
 0x3dd   : > { %v3381_v57 = vpop.f32.mrb[11].mxu0  ;;  %v1550_v58 = vsel %vm1359_vm2, %v1493_v54, -inf }
 0x3de   : > { %v1538_v59 = vpop.f32.mrb[8].mxu1  ;;  %1551 = vmax.xlane.f32.xlu0 %v1550_v58 }
 0x3df   : > { %v1539_v60 = vadd.f32 %v1538_v59, %v1358_v40  ;;  %v3386_v61 = vpop.f32.mrb[9].mxu1 }
 0x3e0   : > { %v1541_v62 = vpop.f32.mrb[10].mxu1 }
 0x3e1   : > { %v3387_v63 = vpop.f32.mrb[11].mxu1  ;;  %v1553_v1 = vsel %vm1359_vm2, %v1539_v60, -inf }
 0x3e2   : > { %1554 = vmax.xlane.f32.xlu0 %v1553_v1 }
 0x3eb   : > { %1593 = vrot.lane.b32.xlu1 %v4931_v21, %s4390_s26 }
 0x3f4   : > { %v1546_v2 = vpop.xlane.xlu0 %1545 }
 0x3f5   : > { %v1556_v3 = vsub.f32 %v1401_v42, %v1546_v2 }
 0x3f7   : > { %v1560_v4 = vmul.f32 1.442695, %v1556_v3 }
 0x3f9   : > { %3765 = vpow2.f32 %v1560_v4 }
 0x403   : > { %v3766_v6 = vpop.eup %3765 }
 0x404   : > { %v1568_v7 = vsel %vm1359_vm2, %v3766_v6, 0.0 }
 0x40f   : > { %1569 = vadd.xlane.f32.xlu1 %v1568_v7 }
 0x467   : > { %v1549_v8 = vpop.xlane.xlu1 %1548 }
 0x468   : > { %v1557_v9 = vsub.f32 %v1447_v48, %v1549_v8 }
 0x46a   : > { %v1562_v10 = vmul.f32 1.442695, %v1557_v9 }
 0x46b   : > { %v1594_v11 = vpop.permute.xlu1 %1593  ;;  %v1552_v12 = vpop.xlane.xlu0 %1551 }
 0x46c   : > { %3767 = vpow2.f32 %v1562_v10  ;;  %v1600_v13 = vsel %vm1598_vm3, %v1594_v11, 0  ;;  %v1558_v14 = vsub.f32 %v1493_v54, %v1552_v12  ;;  %v3238_v10 = vld [vmem:[#allocation13] ss:$0 sm:$0xff] }
 0x46d   : > { %3389 = vmatpush3.bf16.msra.mxu0 %v1600_v13 }
 0x46e   : > { %v1564_v15 = vmul.f32 1.442695, %v1558_v14  ;;  %3400 = vmatprep.subr.bf16.mxu0 %v4385_v0 }
 0x46f   : > { %v1555_v16 = vpop.xlane.xlu0 %1554 }
 0x470   : > { %3769 = vpow2.f32 %v1564_v15  ;;  %v1559_v17 = vsub.f32 %v1539_v60, %v1555_v16 }
 0x472   : > { %v1566_v18 = vmul.f32 1.442695, %v1559_v17 }
 0x474   : > { %3771 = vpow2.f32 %v1566_v18 }
 0x476   : > { %v3768_v19 = vpop.eup %3767 }
 0x477   : > { %v1571_v20 = vsel %vm1359_vm2, %v3768_v19, 0.0 }
 0x478   : > { %1572 = vadd.xlane.f32.xlu0 %v1571_v20 }
 0x47a   : > { %v3770_v21 = vpop.eup %3769 }
 0x47b   : > { %v1574_v22 = vsel %vm1359_vm2, %v3770_v21, 0.0 }
 0x47c   : > { %1575 = vadd.xlane.f32.xlu1 %v1574_v22 }
 0x47e   : > { %v3772_v23 = vpop.eup %3771 }
 0x47f   : > { %v1577_v24 = vsel %vm1359_vm2, %v3772_v23, 0.0 }
 0x480   : > { %1578 = vadd.xlane.f32.xlu0 %v1577_v24  ;;  %v3754_v24 = vld [vmem:[#allocation19 + $0x8] sm:$0xff]  }
 0x48d   : > { %1692 = vrot.lane.b32.xlu1 %v4947_v30, %s4390_s26 }
 0x491   : > { %1741 = vrot.lane.b32.xlu1 %v4952_v32, %s4390_s26 }
 0x496   : > { %1643 = vrot.lane.b32.xlu0 %v4943_v26, %s4390_s26 }
 0x49c   : > { %v1570_v25 = vpop.xlane.xlu1 %1569 }
 0x49d   : > { %3773 = vrcp.f32 %v1570_v25 }
 0x4a7   : > { %v3774_v27 = vpop.eup %3773 }
 0x4a8   : > { %v1584_v28 = vmul.f32 %v3774_v27, %v3766_v6 }
 0x4aa   : > { %v1588_v29 = vpack.c.bf16 %v1584_v28, %v1584_v28 }
 0x4ac   : > { %3391 = vmatmul.mubr.msk.bf16.vlgmr.msra.gmra.mrb[12].mxu0 %vm1359_vm2, %v1588_v29  ;;  %1900 = vst.msk [vmem:[%s4989_s6] sm:$0xf] %vm1899_vm4, %v1588_v29 }
 0x4ad   : > { %3402 = vmatprep.mubr.msk.bf16.mxu0 %vm4386_vm0, %v4385_v0 }
 0x505   : > { %v1573_v30 = vpop.xlane.xlu0 %1572 }
 0x506   : > { %3775 = vrcp.f32 %v1573_v30 }
 0x509   : > { %v1576_v26 = vpop.xlane.xlu1 %1575 }
 0x50a   : > { %3777 = vrcp.f32 %v1576_v26 }
 0x50d   : > { %v1693_v31 = vpop.permute.xlu1 %1692  ;;  %v1579_v32 = vpop.xlane.xlu0 %1578 }
 0x50e   : > { %v1698_v33 = vsel %vm1598_vm3, %v1693_v31, 0  ;;  %3779 = vrcp.f32 %v1579_v32  ;;  %v3242_v32 = vld [vmem:[#allocation14] ss:$0 sm:$0xff] }
 0x50f   : > { %3401 = vmatpush3.bf16.msra.mxu0 %v1698_v33 }
 0x510   : > { %v3776_v34 = vpop.eup %3775  ;;  %3412 = vmatprep.subr.bf16.mxu0 %v4385_v0 }
 0x511   : > { %v1585_v35 = vmul.f32 %v3776_v34, %v3768_v19  ;;  %v1644_v36 = vpop.permute.xlu0 %1643  ;;  %v1742_v38 = vpop.permute.xlu1 %1741  ;;  %v3243_v34 = vld [vmem:[#allocation16] ss:$0 sm:$0xff] }
 0x512   : > { %v1649_v37 = vsel %vm1598_vm3, %v1644_v36, 0  ;;  %v1747_v42 = vsel %vm1598_vm3, %v1742_v38, 0  ;;  %v3248_v38 = vld [vmem:[#allocation20] ss:$0 sm:$0xff] }
 0x513   : > { %3395 = vmatpush3.bf16.msra.mxu1 %v1649_v37  ;;  %v1589_v39 = vpack.c.bf16 %v1585_v35, %v1585_v35 }
 0x514   : > { %v3778_v40 = vpop.eup %3777  ;;  %3406 = vmatprep.subr.bf16.mxu1 %v4385_v0 }
 0x515   : > { %v1586_v41 = vmul.f32 %v3778_v40, %v3770_v21  ;;  %1901 = vst.msk [vmem:[%s4989_s6 + $0x4] sm:$0xf] %vm1899_vm4, %v1589_v39 }
 0x516   : > { %3397 = vmatmul.mubr.msk.bf16.vlgmr.msra.gmra.mrb[12].mxu1 %vm1359_vm2, %v1589_v39 }
 0x517   : > { %3407 = vmatpush3.bf16.msra.mxu1 %v1747_v42  ;;  %v1590_v43 = vpack.c.bf16 %v1586_v41, %v1586_v41  ;;  %3408 = vmatprep.mubr.msk.bf16.mxu1 %vm4386_vm0, %v4385_v0 }
 0x518   : > { %v3780_v44 = vpop.eup %3779  ;;  %3420 = vmatprep.subr.bf16.mxu1 %v4385_v0 }
 0x519   : > { %v1587_v45 = vmul.f32 %v3780_v44, %v3772_v23  ;;  %3403 = vmatmul.mubr.msk.bf16.vlgmr.msra.gmra.mrb[16].mxu0 %vm1359_vm2, %v1590_v43  ;;  %1902 = vst.msk [vmem:[%s4989_s6 + $0x8] sm:$0xf] %vm1899_vm4, %v1590_v43  ;;  %v3753_v23 = vld [vmem:[#allocation19] sm:$0xff]  }
 0x51a   : > { %3416 = vmatprep.mubr.msk.bf16.mxu0 %vm4386_vm0, %v4385_v0  ;;  %3413 = vmatpush3.bf16.msra.mxu0 %v3751_v51 }
 0x51b   : > { %v1591_v46 = vpack.c.bf16 %v1587_v45, %v1587_v45  ;;  %3414 = vmatprep.subr.bf16.mxu0 %v4385_v0 }
 0x51d   : > { %1903 = vst.msk [vmem:[%s4989_s6 + $0xc] sm:$0xf] %vm1899_vm4, %v1591_v46 }
 0x51e   : > { %3409 = vmatmul.mubr.msk.bf16.vlgmr.msra.gmra.mrb[16].mxu1 %vm1359_vm2, %v1591_v46  ;;  %3415 = vmatpush3.bf16.msra.mxu0 %v3752_v52 }
 0x51f   : > { %3424 = vmatprep.mubr.msk.bf16.mxu1 %vm4386_vm0, %v4385_v0  ;;  %3428 = vmatprep.subr.bf16.mxu0 %v4385_v0 }
 0x57f   : > { %v1636_v47 = vpop.f32.mrb[12].mxu0 }
 0x580   : > { %v3392_v48 = vpop.f32.mrb[13].mxu0 }
 0x581   : > { %v1639_v49 = vpop.f32.mrb[14].mxu0 }
 0x582   : > { %v3393_v50 = vpop.f32.mrb[15].mxu0 }
 0x583   : > { %v3244_v50 = vld [vmem:[#allocation17] ss:$0 sm:$0xff] }
 0x5e9   : > { %v1685_v53 = vpop.f32.mrb[12].mxu1 }
 0x5ea   : > { %1790 = vrot.lane.b32.xlu0 %v1685_v53, %s5316_s14  ;;  %v3398_v54 = vpop.f32.mrb[13].mxu1 }
 0x5eb   : > { %v1688_v55 = vpop.f32.mrb[14].mxu1 }
 0x5ec   : > { %v3399_v56 = vpop.f32.mrb[15].mxu1  ;;  %v1734_v57 = vpop.f32.mrb[16].mxu0 }
 0x5ed   : > { %1794 = vrot.lane.b32.xlu1 %v1734_v57, %s5315_s5  ;;  %v3404_v58 = vpop.f32.mrb[17].mxu0  ;;  %s5387_s5 = sld [smem:[#allocation46_spill]] }
 0x5ee   : > { %v1737_v59 = vpop.f32.mrb[18].mxu0 }
 0x5ef   : > { %v3405_v60 = vpop.f32.mrb[19].mxu0 }
 0x5f1   : > { %v1783_v61 = vpop.f32.mrb[16].mxu1 }
 0x5f2   : > { %1798 = vrot.lane.b32.xlu0 %v1783_v61, %s5314_s22  ;;  %v3410_v62 = vpop.f32.mrb[17].mxu1  ;;  %s5386_s22 = sld [smem:[#allocation39_spill]] }
 0x5f3   : > { %v1786_v63 = vpop.f32.mrb[18].mxu1  ;;  %v3755_v27 = vld [vmem:[%s5387_s5] sm:$0xff]   ;;  %v3756_v28 = vld [vmem:[%s5387_s5 + $0x8] sm:$0xff]  }
 0x5f4   : > { %v3411_v1 = vpop.f32.mrb[19].mxu1  ;;  %3421 = vmatpush3.bf16.msra.mxu1 %v3755_v27 }
 0x5f5   : > { %3422 = vmatprep.subr.bf16.mxu1 %v4385_v0 }
 0x5f8   : > { %s1183_s14 = scalar_lea.vmem %s5386_s22, %s4909_s9  ;;  %3423 = vmatpush3.bf16.msra.mxu1 %v3756_v28  ;;  %s5393_s22 = smov 24  }
 0x5f9   : > { %3436 = vmatprep.subr.bf16.mxu1 %v4385_v0 }
 0x65c   : > { %v1791_v2 = vpop.permute.xlu0 %1790 }
 0x65d   : > { %v1801_v4 = vsel %vm1359_vm2, %v1636_v47, %v1791_v2 }
 0x65f   : > { %v1795_v3 = vpop.permute.xlu1 %1794 }
 0x660   : > { %v1803_v6 = vsel %vm1802_vm5, %v1801_v4, %v1795_v3 }
 0x664   : > { %v1799_v7 = vpop.permute.xlu0 %1798 }
 0x665   : > { %v1805_v8 = vsel %vm1804_vm6, %v1803_v6, %v1799_v7  ;;  %v2037_v6 = vld [vmem:[%s4871_s4] sm:$0xf]  ;;  %s5388_s4 = sshll.u32 %s4866_s3, 4 }
 0x666   : > { %v1806_v9 = vpack.c.bf16 %v1805_v8, %v1805_v8  ;;  %v2071_v7 = vunpack.c.l.bf16 %v2037_v6  ;;  %s5112_s9 = scalar_lea.vmem [#allocation26], %s5388_s4  ;;  %s5395_s4 = sld [smem:[#allocation51_spill]] }
 0x668   : > { %3417 = vmatmul.mubr.msk.bf16.vlgmr.msra.gmra.mrb[20].mxu0 %vm1214_vm1, %v1806_v9 }
 0x669   : > { %3432 = vmatprep.mubr.msk.bf16.mxu0 %vm4386_vm0, %v4385_v0  ;;  %3429 = vmatpush3.bf16.msra.mxu0 %v3753_v23 }
 0x66a   : > { %3430 = vmatprep.subr.bf16.mxu0 %v4385_v0 }
 0x66d   : > { %3431 = vmatpush3.bf16.msra.mxu0 %v3754_v24 }
 0x66e   : > { %3442 = vmatprep.subr.bf16.mxu0 %v4385_v0 }
 0x73b   : > { %v1862_v11 = vpop.f32.mrb[20].mxu0 }
 0x73c   : > { %v1863_v12 = vadd.f32 %v3238_v10, %v1862_v11  ;;  %v3418_v13 = vpop.f32.mrb[21].mxu0 }
 0x73d   : > { %v1865_v14 = vpop.f32.mrb[22].mxu0 }
 0x73e   : > { %v3419_v15 = vpop.f32.mrb[23].mxu0  ;;  %v1868_v16 = vadd.f32 %v1863_v12, %v4917_v5  ;;  %v1189_v5 = vld [vmem:[%s1183_s14] sm:$0xff]  ;;  %s5394_s14 = sld [smem:[#allocation55_spill]] }
 0x73f   : > { %v1190_v25 = vpack.c.bf16 %v1189_v5, %v1189_v5 }
 0x740   : > { %v1871_v17 = vsel %vm1214_vm1, %v1868_v16, 0.0 }
 0x741   : > { %1872 = vadd.xlane.f32.xlu1 %v1871_v17  ;;  %3433 = vmatmul.mubr.msk.bf16.vlgmr.msra.gmra.mrb[24].mxu0 %vm1214_vm1, %v1190_v25 }
 0x742   : > { %3444 = vmatprep.mubr.msk.bf16.mxu0 %vm4386_vm0, %v4385_v0 }
 0x7ce   : > { %v1873_v18 = vpop.xlane.xlu1 %1872 }
 0x7cf   : > { %v1875_v19 = vmul.f32 0.03125, %v1873_v18 }
 0x7d1   : > { %v1876_v20 = vsub.f32 %v1868_v16, %v1875_v19 }
 0x7d3   : > { %v1877_v21 = vmul.f32 %v1876_v20, %v1876_v20 }
 0x7d5   : > { %v1878_v22 = vsel %vm1214_vm1, %v1877_v21, 0.0 }
 0x7d6   : > { %1879 = vadd.xlane.f32.xlu0 %v1878_v22 }
 0x814   : > { %v2031_v39 = vpop.f32.mrb[24].mxu0 }
 0x815   : > { %v2032_v40 = vadd.f32 %v3248_v38, %v2031_v39  ;;  %v3434_v41 = vpop.f32.mrb[25].mxu0 }
 0x816   : > { %v2034_v42 = vpop.f32.mrb[26].mxu0 }
 0x817   : > { %2058 = vrot.lane.b32.xlu0 %v2032_v40, %s4387_s18  ;;  %v3435_v43 = vpop.f32.mrb[27].mxu0  ;;  %v5051_v44 = vpack.c.bf16 %v2032_v40, %v2032_v40  ;;  %2061 = vrot.lane.b32.xlu1 %v2032_v40, %s4389_s17 }
 0x819   : > { %v2076_v45 = vsel %vm1359_vm2, %v5051_v44, 0 }
 0x81b   : > { %2064 = vrot.lane.b32.xlu0 %v2032_v40, %s4388_s12 }
 0x863   : > { %v1880_v29 = vpop.xlane.xlu0 %1879 }
 0x864   : > { %v1881_v30 = vmul.f32 0.03125, %v1880_v29 }
 0x866   : > { %v1882_v26 = vadd.f32 1e-05, %v1881_v30 }
 0x868   : > { %3781 = vrsqrt.f32 %v1882_v26 }
 0x872   : > { %v3782_v31 = vpop.eup %3781 }
 0x873   : > { %v1884_v33 = vmul.f32 %v3782_v31, %v1876_v20 }
 0x875   : > { %v1891_v35 = vmul.f32 %v3242_v32, %v1884_v33 }
 0x877   : > { %v5043_v36 = vadd.f32 %v3243_v34, %v1891_v35 }
 0x879   : > { %v1904_v37 = vpack.c.bf16 %v5043_v36, %v5043_v36 }
 0x87b   : > { %3425 = vmatmul.mubr.msk.bf16.vlgmr.msra.gmra.mrb[20].mxu1 %vm1214_vm1, %v1904_v37 }
 0x87c   : > { %3438 = vmatprep.mubr.msk.bf16.mxu1 %vm4386_vm0, %v4385_v0  ;;  %3437 = vmatpush3.bf16.xpose.msra.mxu1 %v2076_v45 }
 0x87d   : > { %3448 = vmatprep.subr.bf16.mxu1 %v4385_v0 }
 0x889   : > { %v2059_v46 = vpop.permute.xlu0 %2058  ;;  %v2062_v49 = vpop.permute.xlu1 %2061 }
 0x88a   : > { %v5058_v47 = vpack.c.bf16 %v2059_v46, %v2059_v46  ;;  %v5063_v51 = vpack.c.bf16 %v2062_v49, %v2062_v49 }
 0x88c   : > { %v2122_v48 = vsel %vm1359_vm2, %v5058_v47, 0  ;;  %v2168_v58 = vsel %vm1359_vm2, %v5063_v51, 0 }
 0x88d   : > { %3443 = vmatpush3.bf16.xpose.msra.mxu0 %v2122_v48  ;;  %v2065_v59 = vpop.permute.xlu0 %2064 }
 0x88e   : > { %3454 = vmatprep.subr.bf16.mxu0 %v4385_v0  ;;  %v5074_v60 = vpack.c.bf16 %v2065_v59, %v2065_v59 }
 0x890   : > { %v2214_v63 = vsel %vm1359_vm2, %v5074_v60, 0 }
 0x94e   : > { %v1965_v52 = vpop.f32.mrb[20].mxu1 }
 0x94f   : > { %v1966_v53 = vadd.f32 %v3244_v50, %v1965_v52  ;;  %v3426_v54 = vpop.f32.mrb[21].mxu1 }
 0x950   : > { %v1968_v55 = vpop.f32.mrb[22].mxu1 }
 0x951   : > { %v2053_v56 = vpack.c.bf16 %v1966_v53, %v1966_v53  ;;  %v3427_v57 = vpop.f32.mrb[23].mxu1  ;;  %2044 = vrot.lane.b32.xlu1 %v1966_v53, %s4387_s18  ;;  %2050 = vrot.lane.b32.xlu0 %v1966_v53, %s4388_s12  ;;  %s5389_s18 = sld [smem:[#allocation49_spill]]  ;;  %s5390_s12 = smov 8  }
 0x953   : > { %3439 = vmatmul.mubr.msk.bf16.vlgmr.msra.gmra.mrb[24].mxu1 %vm1359_vm2, %v2053_v56 }
 0x954   : > { %3449 = vmatpush3.bf16.xpose.msra.mxu1 %v2168_v58  ;;  %3450 = vmatprep.mubr.msk.bf16.mxu1 %vm4386_vm0, %v4385_v0 }
 0x955   : > { %2047 = vrot.lane.b32.xlu1 %v1966_v53, %s4389_s17  ;;  %3460 = vmatprep.subr.bf16.mxu1 %v4385_v0  ;;  %s5391_s17 = smov 16  }
 0x9c3   : > { %v2045_v61 = vpop.permute.xlu1 %2044  ;;  %v2051_v3 = vpop.permute.xlu0 %2050 }
 0x9c4   : > { %v2054_v62 = vpack.c.bf16 %v2045_v61, %v2045_v61  ;;  %v2056_v4 = vpack.c.bf16 %v2051_v3, %v2051_v3 }
 0x9c6   : > { %3445 = vmatmul.mubr.msk.bf16.vlgmr.msra.gmra.mrb[28].mxu0 %vm1359_vm2, %v2054_v62 }
 0x9c7   : > { %3455 = vmatpush3.bf16.xpose.msra.mxu0 %v2214_v63  ;;  %v2048_v1 = vpop.permute.xlu1 %2047  ;;  %3456 = vmatprep.mubr.msk.bf16.mxu0 %vm4386_vm0, %v4385_v0 }
 0x9c8   : > { %v2055_v2 = vpack.c.bf16 %v2048_v1, %v2048_v1  ;;  %3466 = vmatprep.subr.bf16.mxu0 %v4385_v0 }
 0x9ca   : > { %3451 = vmatmul.mubr.msk.bf16.vlgmr.msra.gmra.mrb[28].mxu1 %vm1359_vm2, %v2055_v2 }
 0x9cb   : > { %3462 = vmatprep.mubr.msk.bf16.mxu1 %vm4386_vm0, %v4385_v0 }
 0x9ce   : > { %3457 = vmatmul.mubr.msk.bf16.vlgmr.msra.gmra.mrb[32].mxu0 %vm1359_vm2, %v2056_v4 }
 0x9cf   : > { %3468 = vmatprep.mubr.msk.bf16.mxu0 %vm4386_vm0, %v4385_v0 }
 0xa26   : > { %v2112_v8 = vpop.f32.mrb[24].mxu1 }
 0xa27   : > { %v2113_v9 = vadd.f32 %v2112_v8, %v2071_v7  ;;  %v3440_v10 = vpop.f32.mrb[25].mxu1 }
 0xa28   : > { %v2115_v11 = vpop.f32.mrb[26].mxu1 }
 0xa29   : > { %v3441_v12 = vpop.f32.mrb[27].mxu1  ;;  %v2256_v13 = vsel %vm1359_vm2, %v2113_v9, -inf }
 0xa2a   : > { %2257 = vmax.xlane.f32.xlu1 %v2256_v13 }
 0xa99   : > { %v2158_v14 = vpop.f32.mrb[28].mxu0 }
 0xa9a   : > { %v2159_v15 = vadd.f32 %v2158_v14, %v2071_v7  ;;  %v3446_v16 = vpop.f32.mrb[29].mxu0 }
 0xa9b   : > { %v2161_v17 = vpop.f32.mrb[30].mxu0 }
 0xa9c   : > { %v3447_v18 = vpop.f32.mrb[31].mxu0  ;;  %v2259_v19 = vsel %vm1359_vm2, %v2159_v15, -inf }
 0xa9d   : > { %v2204_v20 = vpop.f32.mrb[28].mxu1  ;;  %2260 = vmax.xlane.f32.xlu0 %v2259_v19  ;;  %v3757_v18 = vld [vmem:[%s5389_s18] sm:$0xff]   ;;  %v3758_v19 = vld [vmem:[%s5389_s18 + $0x8] sm:$0xff]   ;;  %s4394_s18 = smov [#allocation24]  }
 0xa9e   : > { %v2205_v21 = vadd.f32 %v2204_v20, %v2071_v7  ;;  %v3452_v22 = vpop.f32.mrb[29].mxu1  ;;  %s4173_s19 = sshll.u32 %s4394_s18, 4  ;;  %s4174_s19 = int_to_ptr.vmem [resolvable:$false] %s4173_s19 }
 0xa9f   : > { %v2207_v23 = vpop.f32.mrb[30].mxu1  ;;  %s4175_s20 = scalar_lea.vmem %s4174_s19, 512 }
 0xaa0   : > { %v3453_v24 = vpop.f32.mrb[31].mxu1  ;;  %v2262_v5 = vsel %vm1359_vm2, %v2205_v21, -inf }
 0xaa1   : > { %2263 = vmax.xlane.f32.xlu0 %v2262_v5  ;;  %v2250_v25 = vpop.f32.mrb[32].mxu0 }
 0xaa2   : > { %v2251_v27 = vadd.f32 %v2250_v25, %v2071_v7  ;;  %v3458_v28 = vpop.f32.mrb[33].mxu0 }
 0xaa3   : > { %v2253_v29 = vpop.f32.mrb[34].mxu0 }
 0xaa4   : > { %v3459_v30 = vpop.f32.mrb[35].mxu0  ;;  %v2265_v26 = vsel %vm1359_vm2, %v2251_v27, -inf }
 0xaa5   : > { %2266 = vmax.xlane.f32.xlu1 %v2265_v26 }
 0xab6   : > { %2354 = vrot.lane.b32.xlu1 %v5058_v47, %s4390_s26 }
 0xab7   : > { %2305 = vrot.lane.b32.xlu0 %v5051_v44, %s4390_s26  ;;  %v2258_v31 = vpop.xlane.xlu1 %2257 }
 0xab8   : > { %v2268_v32 = vsub.f32 %v2113_v9, %v2258_v31 }
 0xaba   : > { %v2272_v33 = vmul.f32 1.442695, %v2268_v32 }
 0xabc   : > { %3783 = vpow2.f32 %v2272_v33 }
 0xac6   : > { %v3784_v34 = vpop.eup %3783 }
 0xac7   : > { %v2280_v35 = vsel %vm1359_vm2, %v3784_v34, 0.0 }
 0xad6   : > { %2281 = vadd.xlane.f32.xlu0 %v2280_v35 }
 0xb2a   : > { %v2261_v37 = vpop.xlane.xlu0 %2260 }
 0xb2b   : > { %v2269_v38 = vsub.f32 %v2159_v15, %v2261_v37 }
 0xb2d   : > { %v2274_v39 = vmul.f32 1.442695, %v2269_v38 }
 0xb2e   : > { %v2264_v40 = vpop.xlane.xlu0 %2263 }
 0xb2f   : > { %3785 = vpow2.f32 %v2274_v39  ;;  %v2270_v41 = vsub.f32 %v2205_v21, %v2264_v40 }
 0xb31   : > { %v2276_v42 = vmul.f32 1.442695, %v2270_v41 }
 0xb32   : > { %v2306_v43 = vpop.permute.xlu0 %2305  ;;  %v2267_v45 = vpop.xlane.xlu1 %2266 }
 0xb33   : > { %3787 = vpow2.f32 %v2276_v42  ;;  %v2311_v44 = vsel %vm1598_vm3, %v2306_v43, 0  ;;  %v2271_v46 = vsub.f32 %v2251_v27, %v2267_v45 }
 0xb34   : > { %3461 = vmatpush3.bf16.msra.mxu1 %v2311_v44 }
 0xb35   : > { %v2278_v47 = vmul.f32 1.442695, %v2271_v46  ;;  %3472 = vmatprep.subr.bf16.mxu1 %v4385_v0 }
 0xb36   : > { %v2355_v48 = vpop.permute.xlu1 %2354 }
 0xb37   : > { %3789 = vpow2.f32 %v2278_v47  ;;  %v2360_v49 = vsel %vm1598_vm3, %v2355_v48, 0 }
 0xb38   : > { %3467 = vmatpush3.bf16.msra.mxu0 %v2360_v49 }
 0xb39   : > { %v3786_v50 = vpop.eup %3785  ;;  %3478 = vmatprep.subr.bf16.mxu0 %v4385_v0 }
 0xb3a   : > { %v2283_v52 = vsel %vm1359_vm2, %v3786_v50, 0.0 }
 0xb3b   : > { %2284 = vadd.xlane.f32.xlu1 %v2283_v52 }
 0xb3d   : > { %v3788_v53 = vpop.eup %3787 }
 0xb3e   : > { %v2286_v54 = vsel %vm1359_vm2, %v3788_v53, 0.0 }
 0xb3f   : > { %2287 = vadd.xlane.f32.xlu0 %v2286_v54  ;;  %v3760_v54 = vld [vmem:[#allocation22 + $0x8] sm:$0xff]  }
 0xb41   : > { %v3790_v55 = vpop.eup %3789 }
 0xb42   : > { %v2289_v56 = vsel %vm1359_vm2, %v3790_v55, 0.0 }
 0xb43   : > { %2290 = vadd.xlane.f32.xlu1 %v2289_v56 }
 0xb54   : > { %2403 = vrot.lane.b32.xlu1 %v5063_v51, %s4390_s26 }
 0xb55   : > { %2452 = vrot.lane.b32.xlu0 %v5074_v60, %s4390_s26  ;;  %s5392_s26 = sld [smem:[#allocation50_spill]] }
 0xb5b   : > { %v3260_v39 = vld [vmem:[%s5392_s26] ss:$0 sm:$0xff]  ;;  %s5398_s26 = sld [smem:[#allocation56_spill]] }
 0xb63   : > { %v2282_v57 = vpop.xlane.xlu0 %2281 }
 0xb64   : > { %3791 = vrcp.f32 %v2282_v57 }
 0xb6e   : > { %v3792_v58 = vpop.eup %3791 }
 0xb6f   : > { %v2296_v59 = vmul.f32 %v3792_v58, %v3784_v34 }
 0xb71   : > { %v2300_v61 = vpack.c.bf16 %v2296_v59, %v2296_v59 }
 0xb73   : > { %3463 = vmatmul.mubr.msk.bf16.vlgmr.msra.gmra.mrb[32].mxu1 %vm1359_vm2, %v2300_v61  ;;  %2607 = vst.msk [vmem:[%s5112_s9] sm:$0xf] %vm1899_vm4, %v2300_v61  ;;  %v3264_v61 = vld [vmem:[%s5395_s4] ss:$0 sm:$0xff]  ;;  %s3288_s4 = sshll.u32 %s4331_s0, 8 }
 0xb74   : > { %3474 = vmatprep.mubr.msk.bf16.mxu1 %vm4386_vm0, %v4385_v0 }
 0xbc8   : > { %v2285_v51 = vpop.xlane.xlu1 %2284 }
 0xbc9   : > { %3793 = vrcp.f32 %v2285_v51 }
 0xbcc   : > { %v2288_v62 = vpop.xlane.xlu0 %2287 }
 0xbcd   : > { %3795 = vrcp.f32 %v2288_v62 }
 0xbd0   : > { %v2291_v60 = vpop.xlane.xlu1 %2290  ;;  %v2453_v3 = vpop.permute.xlu0 %2452 }
 0xbd1   : > { %3797 = vrcp.f32 %v2291_v60  ;;  %v2458_v9 = vsel %vm1598_vm3, %v2453_v3, 0  ;;  %v3764_v3 = vld [vmem:[%s5394_s14 + $0x18] sm:$0xff]  }
 0xbd3   : > { %v3794_v63 = vpop.eup %3793 }
 0xbd4   : > { %v2297_v1 = vmul.f32 %v3794_v63, %v3786_v50  ;;  %v2404_v2 = vpop.permute.xlu1 %2403 }
 0xbd5   : > { %v2409_v4 = vsel %vm1598_vm3, %v2404_v2, 0  ;;  %v3763_v2 = vld [vmem:[%s5394_s14 + $0x10] sm:$0xff]  }
 0xbd6   : > { %3473 = vmatpush3.bf16.msra.mxu1 %v2409_v4  ;;  %v2301_v6 = vpack.c.bf16 %v2297_v1, %v2297_v1 }
 0xbd7   : > { %v3796_v7 = vpop.eup %3795  ;;  %3484 = vmatprep.subr.bf16.mxu1 %v4385_v0 }
 0xbd8   : > { %v2298_v8 = vmul.f32 %v3796_v7, %v3788_v53  ;;  %3469 = vmatmul.mubr.msk.bf16.vlgmr.msra.gmra.mrb[36].mxu0 %vm1359_vm2, %v2301_v6  ;;  %2608 = vst.msk [vmem:[%s5112_s9 + $0x4] sm:$0xf] %vm1899_vm4, %v2301_v6  ;;  %v3759_v53 = vld [vmem:[#allocation22] sm:$0xff]  }
 0xbd9   : > { %3479 = vmatpush3.bf16.msra.mxu0 %v2458_v9  ;;  %3480 = vmatprep.mubr.msk.bf16.mxu0 %vm4386_vm0, %v4385_v0 }
 0xbda   : > { %v2302_v10 = vpack.c.bf16 %v2298_v8, %v2298_v8  ;;  %3492 = vmatprep.subr.bf16.mxu0 %v4385_v0 }
 0xbdb   : > { %v3798_v11 = vpop.eup %3797 }
 0xbdc   : > { %v2299_v12 = vmul.f32 %v3798_v11, %v3790_v55  ;;  %3475 = vmatmul.mubr.msk.bf16.vlgmr.msra.gmra.mrb[36].mxu1 %vm1359_vm2, %v2302_v10  ;;  %2609 = vst.msk [vmem:[%s5112_s9 + $0x8] sm:$0xf] %vm1899_vm4, %v2302_v10  ;;  %v3762_v55 = vld [vmem:[%s5394_s14 + $0x8] sm:$0xff]  }
 0xbdd   : > { %3488 = vmatprep.mubr.msk.bf16.mxu1 %vm4386_vm0, %v4385_v0  ;;  %3485 = vmatpush3.bf16.msra.mxu1 %v3757_v18 }
 0xbde   : > { %v2303_v13 = vpack.c.bf16 %v2299_v12, %v2299_v12  ;;  %3486 = vmatprep.subr.bf16.mxu1 %v4385_v0 }
 0xbe0   : > { %3481 = vmatmul.mubr.msk.bf16.vlgmr.msra.gmra.mrb[40].mxu0 %vm1359_vm2, %v2303_v13  ;;  %2610 = vst.msk [vmem:[%s5112_s9 + $0xc] sm:$0xf] %vm1899_vm4, %v2303_v13  ;;  %v3270_v13 = vld [vmem:[%s5398_s26] ss:$0 sm:$0xff]  ;;  %s5400_s26 = sand.u32 1, %s4585_s23  }
 0xbe1   : > { %3496 = vmatprep.mubr.msk.bf16.mxu0 %vm4386_vm0, %v4385_v0  ;;  %3487 = vmatpush3.bf16.msra.mxu1 %v3758_v19  ;;  %s5184_s5 = scalar_lea.sflag [#allocation25], %s5400_s26 }
 0xbe2   : > { %3500 = vmatprep.subr.bf16.mxu1 %v4385_v0  ;;  %3493 = vmatpush3.bf16.msra.mxu0 %v3759_v53 }
 0xbe3   : > { %3494 = vmatprep.subr.bf16.mxu0 %v4385_v0 }
 0xbe6   : > { %3495 = vmatpush3.bf16.msra.mxu0 %v3760_v54 }
 0xc46   : > { %v2347_v14 = vpop.f32.mrb[32].mxu1 }
 0xc47   : > { %v3464_v15 = vpop.f32.mrb[33].mxu1 }
 0xc48   : > { %v2350_v16 = vpop.f32.mrb[34].mxu1 }
 0xc49   : > { %v3465_v17 = vpop.f32.mrb[35].mxu1 }
 0xcab   : > { %v2396_v20 = vpop.f32.mrb[36].mxu0 }
 0xcac   : > { %2501 = vrot.lane.b32.xlu1 %v2396_v20, %s5390_s12  ;;  %v3470_v21 = vpop.f32.mrb[37].mxu0  ;;  %s5396_s12 = sld [smem:[#allocation52_spill]] }
 0xcad   : > { %v2399_v22 = vpop.f32.mrb[38].mxu0 }
 0xcae   : > { %v3471_v23 = vpop.f32.mrb[39].mxu0 }
 0xcaf   : > { %v2445_v24 = vpop.f32.mrb[36].mxu1 }
 0xcb0   : > { %2505 = vrot.lane.b32.xlu0 %v2445_v24, %s5391_s17  ;;  %v3476_v5 = vpop.f32.mrb[37].mxu1  ;;  %s5397_s17 = sld [smem:[#allocation54_spill]] }
 0xcb1   : > { %v2448_v25 = vpop.f32.mrb[38].mxu1 }
 0xcb2   : > { %v3477_v27 = vpop.f32.mrb[39].mxu1  ;;  %v3265_v62 = vld [vmem:[%s5396_s12] ss:$0 sm:$0xff] }
 0xcb3   : > { %v2494_v28 = vpop.f32.mrb[40].mxu0 }
 0xcb4   : > { %2509 = vrot.lane.b32.xlu1 %v2494_v28, %s5393_s22  ;;  %v3482_v29 = vpop.f32.mrb[41].mxu0  ;;  %s5399_s22 = sld [smem:[#allocation60_spill]] }
 0xcb5   : > { %v2497_v30 = vpop.f32.mrb[42].mxu0 }
 0xcb6   : > { %v3483_v26 = vpop.f32.mrb[43].mxu0  ;;  %v3266_v4 = vld [vmem:[%s5397_s17] ss:$0 sm:$0xff]  ;;  %s2833_s17 = sshll.u32 %s4989_s6, 4  ;;  %s5180_s17 = int_to_ptr.vmem [resolvable:$true] %s2833_s17 }
 0xcb7   : > { %p4176_p13 = scmp.lt.s32.totalorder %s5180_s17, %s4174_s19 }
 0xcba   : > { %s5177_s12 = scalar_lea.hbm %s5399_s22, %s3288_s4 }
 0xd1e   : > { %v2502_v31 = vpop.permute.xlu1 %2501 }
 0xd1f   : > { %v2512_v33 = vsel %vm1359_vm2, %v2347_v14, %v2502_v31 }
 0xd22   : > { %v2506_v32 = vpop.permute.xlu0 %2505 }
 0xd23   : > { %v2513_v34 = vsel %vm1802_vm5, %v2512_v33, %v2506_v32 }
 0xd26   : > { %v2510_v35 = vpop.permute.xlu1 %2509 }
 0xd27   : > { %v2514_v37 = vsel %vm1804_vm6, %v2513_v34, %v2510_v35 }
 0xd28   : > { %v2515_v38 = vpack.c.bf16 %v2514_v37, %v2514_v37 }
 0xd2a   : > { %3489 = vmatmul.mubr.msk.bf16.vlgmr.msra.gmra.mrb[40].mxu1 %vm1214_vm1, %v2515_v38 }
 0xd2b   : > { %3508 = vmatprep.mubr.msk.bf16.mxu1 %vm4386_vm0, %v4385_v0 }
 0xdfd   : > { %v2571_v40 = vpop.f32.mrb[40].mxu1 }
 0xdfe   : > { %v2572_v41 = vadd.f32 %v3260_v39, %v2571_v40  ;;  %v3490_v42 = vpop.f32.mrb[41].mxu1 }
 0xdff   : > { %v2574_v43 = vpop.f32.mrb[42].mxu1 }
 0xe00   : > { %v3491_v45 = vpop.f32.mrb[43].mxu1  ;;  %v2577_v44 = vadd.f32 %v2572_v41, %v5043_v36  ;;  %v3761_v36 = vld [vmem:[%s5394_s14] sm:$0xff]   ;;  %s4169_s14 = scalar_lea.vmem %s5180_s17, 256 }
 0xe01   : > { %3501 = vmatpush3.bf16.msra.mxu1 %v3761_v36  ;;  %p4170_p11 = scmp.ne.s32.totalorder %s5180_s17, %s4169_s14  ;;  %p4177_p1 = scmp.lt.s32.totalorder %s4175_s20, %s4169_s14 }
 0xe02   : > { %v2580_v46 = vsel %vm1214_vm1, %v2577_v44, 0.0  ;;  %3502 = vmatprep.subr.bf16.mxu1 %v4385_v0 }
 0xe03   : > { %2581 = vadd.xlane.f32.xlu0 %v2580_v46  ;;  %p4171_p7 = pnand %p4170_p11, %p5401_p5  ;;  %p4178_p2 = por %p4177_p1, %p4176_p13 }
 0xe05   : > { %3503 = vmatpush3.bf16.msra.mxu1 %v3762_v55  ;;  %p4172_p10 = pneg %p4171_p7 }
 0xe06   : > { %3504 = vmatprep.subr.bf16.mxu1 %v4385_v0 }
 0xe07   : > { %p4179_p8 = pnand %p4178_p2, %p4172_p10 }
 0xe09   : > { %3505 = vmatpush3.bf16.msra.mxu1 %v3763_v2 }
 0xe0a   : > { %3506 = vmatprep.subr.bf16.mxu1 %v4385_v0 }
 0xe0d   : > { %3507 = vmatpush3.bf16.msra.mxu1 %v3764_v3 }
 0xe90   : > { %v2582_v47 = vpop.xlane.xlu0 %2581 }
 0xe91   : > { %v2583_v48 = vmul.f32 0.03125, %v2582_v47 }
 0xe93   : > { %v2584_v49 = vsub.f32 %v2577_v44, %v2583_v48 }
 0xe95   : > { %v2585_v50 = vmul.f32 %v2584_v49, %v2584_v49 }
 0xe97   : > { %v2586_v52 = vsel %vm1214_vm1, %v2585_v50, 0.0 }
 0xe98   : > { %2587 = vadd.xlane.f32.xlu1 %v2586_v52 }
 0xf25   : > { %v2588_v56 = vpop.xlane.xlu1 %2587 }
 0xf26   : > { %v2589_v57 = vmul.f32 0.03125, %v2588_v56 }
 0xf28   : > { %v2590_v58 = vadd.f32 1e-05, %v2589_v57 }
 0xf2a   : > { %3799 = vrsqrt.f32 %v2590_v58 }
 0xf34   : > { %v3800_v59 = vpop.eup %3799 }
 0xf35   : > { %v2592_v51 = vmul.f32 %v3800_v59, %v2584_v49 }
 0xf37   : > { %v2599_v60 = vmul.f32 %v3264_v61, %v2592_v51 }
 0xf39   : > { %v2606_v63 = vadd.f32 %v3265_v62, %v2599_v60 }
 0xf3b   : > { %v2611_v1 = vpack.c.bf16 %v2606_v63, %v2606_v63 }
 0xf3d   : > { %3497 = vmatmul.mubr.msk.bf16.vlgmr.msra.gmra.mrb[44].mxu0 %vm1214_vm1, %v2611_v1 }
0x1010   : > { %v2672_v6 = vpop.f32.mrb[44].mxu0 }
0x1011   : > { %v2673_v7 = vadd.f32 %v3266_v4, %v2672_v6  ;;  %v3498_v8 = vpop.f32.mrb[45].mxu0 }
0x1012   : > { %v2675_v9 = vpop.f32.mrb[46].mxu0 }
0x1013   : > { %v2678_v10 = vmax.f32 %v2673_v7, 0.0  ;;  %v3499_v11 = vpop.f32.mrb[47].mxu0 }
0x1015   : > { %v2679_v12 = vpack.c.bf16 %v2678_v10, %v2678_v10 }
0x1017   : > { %3509 = vmatmul.mubr.msk.bf16.vlgmr.msra.gmra.mrb[44].mxu1 %vm2719_vm7, %v2679_v12 }
0x10ea   : > { %v2757_v14 = vpop.f32.mrb[44].mxu1 }
0x10eb   : > { %v2758_v15 = vadd.f32 %v3270_v13, %v2757_v14  ;;  %v3510_v0 = vpop.f32.mrb[45].mxu1 }
0x10ec   : > { %v2760_v16 = vpop.f32.mrb[46].mxu1 }
0x10ed   : > { %v3511_v17 = vpop.f32.mrb[47].mxu1  ;;  %v2763_v18 = vadd.f32 %v2758_v15, %v2606_v63 }
0x10ef   : > { %v2766_v19 = vsel %vm1214_vm1, %v2763_v18, 0.0 }
0x10f0   : > { %2767 = vadd.xlane.f32.xlu0 %v2766_v19 }
0x117d   : > { %v2768_v20 = vpop.xlane.xlu0 %2767 }
0x117e   : > { %v2769_v21 = vmul.f32 0.03125, %v2768_v20 }
0x1180   : > { %v5168_v22 = vsub.f32 %v2763_v18, %v2769_v21 }
0x1182   : > { %v2771_v23 = vmul.f32 %v5168_v22, %v5168_v22 }
0x1184   : > { %v2772_v24 = vsel %vm1214_vm1, %v2771_v23, 0.0 }
0x1185   : > { %2773 = vadd.xlane.f32.xlu0 %v2772_v24 }
0x1186   : > { %4182 = shalt.err (!%p4179_p8)
}
0x1187   : > { %s4183_s23 = scalar_lea.hbm %s5177_s12, 256  ;;  %s4187_s6 = scalar_lea.hbm %s5399_s22, 512 }
0x1188   : > { %p4184_p4 = scmp.ne.s32.totalorder %s5177_s12, %s4183_s23  ;;  %p4188_p6 = scmp.lt.u32.totalorder %s5177_s12, %s5399_s22 }
0x1189   : > { %p4189_p0 = scmp.lt.u32.totalorder %s4187_s6, %s4183_s23  ;;  %p4191_p11 = scmp.lt.u32.totalorder %s4183_s23, %s5177_s12 }
0x118a   : > { %p4185_p3 = pnand %p4184_p4, %p5401_p5 }
0x118b   : > { %p4190_p12 = por %p4189_p0, %p4188_p6 }
0x118c   : > { %p4186_p9 = pneg %p4185_p3 }
0x118d   : > { %p4192_p7 = por %p4191_p11, %p4190_p12 }
0x118f   : > { %p4193_p10 = pnand %p4192_p7, %p4186_p9 }
0x1191   : > { %4196 = shalt.err (!%p4193_p10)
}
0x1192   : > { %s4395_s19 = smov 64   ;;  %s5402_s20 = sld [smem:[#allocation61_spill]] }
0x1193   : > { %s4396_s18 = smov 4   ;;  %s2850_s26 = sshll.u32 %s5112_s9, 4  ;;  %s5213_s26 = int_to_ptr.vmem [resolvable:$true] %s2850_s26 }
0x1194   : > { %3563 = dma.vmem_to_hbm [thread:$0]  (%p5401_p5), %s5180_s17, 256, %s5177_s12, %s5184_s5, %s4395_s19, %s4395_s19, %s4396_s18  }
0x1195   : > { %s4197_s23 = scalar_lea.vmem %s5213_s26, 256  ;;  %s4397_s6 = smov [#allocation26]  }
0x1196   : > { %p4198_p13 = scmp.ne.s32.totalorder %s5213_s26, %s4197_s23  ;;  %s4201_s21 = sshll.u32 %s4397_s6, 4  ;;  %s4202_s21 = int_to_ptr.vmem [resolvable:$false] %s4201_s21 }
0x1197   : > { %s4203_s22 = scalar_lea.vmem %s4202_s21, 512  ;;  %p4204_p8 = scmp.lt.s32.totalorder %s5213_s26, %s4202_s21 }
0x1198   : > { %s5210_s14 = scalar_lea.hbm %s5402_s20, %s3288_s4  ;;  %p4199_p1 = pnand %p4198_p13, %p5401_p5 }
0x1199   : > { %p4205_p4 = scmp.lt.s32.totalorder %s4203_s22, %s4197_s23 }
0x119a   : > { %p4200_p2 = pneg %p4199_p1 }
0x119b   : > { %p4206_p3 = por %p4205_p4, %p4204_p8 }
0x119d   : > { %p4207_p9 = pnand %p4206_p3, %p4200_p2 }
0x119f   : > { %4210 = shalt.err (!%p4207_p9)
}
0x11a0   : > { %s4211_s9 = scalar_lea.hbm %s5210_s14, 256  ;;  %s4215_s4 = scalar_lea.hbm %s5402_s20, 512 }
0x11a1   : > { %p4212_p6 = scmp.ne.s32.totalorder %s5210_s14, %s4211_s9  ;;  %p4216_p11 = scmp.lt.u32.totalorder %s5210_s14, %s5402_s20 }
0x11a2   : > { %p4217_p7 = scmp.lt.u32.totalorder %s4215_s4, %s4211_s9  ;;  %p4219_p13 = scmp.lt.u32.totalorder %s4211_s9, %s5210_s14 }
0x11a3   : > { %p4213_p0 = pnand %p4212_p6, %p5401_p5 }
0x11a4   : > { %p4218_p10 = por %p4217_p7, %p4216_p11 }
0x11a5   : > { %p4214_p12 = pneg %p4213_p0 }
0x11a6   : > { %p4220_p1 = por %p4219_p13, %p4218_p10 }
0x11a8   : > { %p4221_p2 = pnand %p4220_p1, %p4214_p12 }
0x11aa   : > { %4224 = shalt.err (!%p4221_p2)
}
0x11ab   : > { %s5403_s21 = sld [smem:[#allocation57_spill]]  ;;  %s5404_s22 = sld [smem:[#allocation58_spill]] }
0x11ac   : > { %s5405_s12 = sld [smem:[#allocation59_spill]]  ;;  %s3216_s17 = sshll.u32 %s4866_s3, 3 }
0x11ad   : > { %3564 = dma.vmem_to_hbm [thread:$0]  (%p5401_p5), %s5213_s26, 256, %s5210_s14, %s5184_s5, %s4395_s19, %s4395_s19, %s4396_s18  }
0x11ae   : > { %s3281_s23 = sshll.u32 %s4331_s0, 7  ;;  %s1154_s6 = scalar_lea.vmem [#allocation23], %s3216_s17 }
0x11af   : > { %s2819_s9 = sshll.u32 %s1154_s6, 4  ;;  %s2795_s5 = scalar_lea.sflag [#allocation4], %s4866_s3  ;;  %s5244_s9 = int_to_ptr.vmem [resolvable:$true] %s2819_s9 }
0x11b0   : > { %s4225_s19 = scalar_lea.vmem %s5244_s9, 128  ;;  %s4398_s0 = smov [#allocation23]  }
0x11b1   : > { %v3276_v29 = vld [vmem:[%s5403_s21] ss:$0 sm:$0xff]  ;;  %p4226_p8 = scmp.ne.s32.totalorder %s5244_s9, %s4225_s19  ;;  %s4229_s18 = sshll.u32 %s4398_s0, 4  ;;  %s4230_s18 = int_to_ptr.vmem [resolvable:$false] %s4229_s18 }
0x11b2   : > { %v3277_v26 = vld [vmem:[%s5404_s22] ss:$0 sm:$0xff]  ;;  %s5242_s4 = scalar_lea.hbm %s5405_s12, %s3281_s23  ;;  %s4231_s14 = scalar_lea.vmem %s4230_s18, 256 }
0x11b3   : > { %p4227_p4 = pnand %p4226_p8, %p5401_p5  ;;  %p4232_p9 = scmp.lt.s32.totalorder %s5244_s9, %s4230_s18 }
0x11b4   : > { %p4233_p6 = scmp.lt.s32.totalorder %s4231_s14, %s4225_s19 }
0x11b5   : > { %p4228_p3 = pneg %p4227_p4 }
0x11b6   : > { %p4234_p0 = por %p4233_p6, %p4232_p9 }
0x11b8   : > { %p4235_p12 = pnand %p4234_p0, %p4228_p3 }
0x1212   : > { %v2774_v5 = vpop.xlane.xlu0 %2773 }
0x1213   : > { %v2775_v25 = vmul.f32 0.03125, %v2774_v5 }
0x1215   : > { %v2776_v27 = vadd.f32 1e-05, %v2775_v25 }
0x1217   : > { %3801 = vrsqrt.f32 %v2776_v27 }
0x1221   : > { %v3802_v28 = vpop.eup %3801 }
0x1222   : > { %v2778_v30 = vmul.f32 %v3802_v28, %v5168_v22 }
0x1224   : > { %v2785_v31 = vmul.f32 %v3276_v29, %v2778_v30 }
0x1226   : > { %v2792_v32 = vadd.f32 %v3277_v26, %v2785_v31 }
0x1228   : > { %2793 = vst.msk [vmem:[%s1154_s6] sm:$0xff] %vm1214_vm1, %v2792_v32 }
0x1229   : > { %4238 = shalt.err (!%p4235_p12)
}
0x122a   : > { %s4239_s3 = scalar_lea.hbm %s5242_s4, 128  ;;  %s4243_s26 = scalar_lea.hbm %s5405_s12, 256 }
0x122b   : > { %p4240_p11 = scmp.ne.s32.totalorder %s5242_s4, %s4239_s3  ;;  %p4244_p13 = scmp.lt.u32.totalorder %s5242_s4, %s5405_s12 }
0x122c   : > { %p4245_p1 = scmp.lt.u32.totalorder %s4243_s26, %s4239_s3  ;;  %p4247_p8 = scmp.lt.u32.totalorder %s4239_s3, %s5242_s4 }
0x122d   : > { %p4241_p7 = pnand %p4240_p11, %p5401_p5 }
0x122e   : > { %p4246_p2 = por %p4245_p1, %p4244_p13 }
0x122f   : > { %p4242_p10 = pneg %p4241_p7 }
0x1230   : > { %p4248_p4 = por %p4247_p8, %p4246_p2 }
0x1232   : > { %p4249_p3 = pnand %p4248_p4, %p4242_p10 }
0x1234   : > { %4252 = shalt.err (!%p4249_p3)
}
0x1235   : > { %3562 = dma.vmem_to_hbm [thread:$0]  (%p5401_p5), %s5244_s9, 128, %s5242_s4, %s2795_s5  }
0x1236 PF: > { %s2865_s21 = sand.u32 1, %s4319_s7   ;;  %p5406_p9 = scmp.ne.s32.totalorder %s5366_s13, 0 }
0x1237   : > { %p5407_p6 = scmp.ge.s32.totalorder %s4339_s16, 2  ;;  %s2866_s22 = scalar_lea.sflag [#allocation4], %s2865_s21 }
0x1239   : > { %p3610_p0 = pnand %p5407_p6, %p5406_p9 }
0x123b   : > { %4310 = dma.done.wait (!%p3610_p0), %s2866_s22, 128  }
0x123c   : > { %4312 = vsyncadd (!%p3610_p0), %s2866_s22, 4294967168  ;;  %s5408_s17 = sadd.s32 4294967294, %s4339_s16  }
0x123d   : > { %s2874_s23 = sand.u32 1, %s5408_s17  }
0x123e   : > { %s2875_s6 = scalar_lea.sflag [#allocation25], %s2874_s23 }
0x123f   : > { %4314 = dma.done.wait (!%p3610_p0), %s2875_s6, 512  }
0x1240   : > { %4316 = vsyncadd (!%p3610_p0), %s2875_s6, 4294966784  ;;  %s85_s16 = sadd.s32 1, %s4339_s16   ;;  %s5409_s7 = smov %s4323_s10 }
0x1241   : > { %p82_p5 = scmp.ge.s32.totalorder %s85_s16, 4   ;;  %s5410_s10 = smov %s4327_s11 }
0x1242   : > { %s5411_s11 = smov %s4816_s8  ;;  %s5412_s0 = smov %s4335_s15 }
0x1243   : > { %s5413_s15 = smov %s5415_s2  ;;  %84 = sbr.rel (!%p82_p5) target bundleno = 72 (0x48), region = 293 }
0x124a   :  { %2889 = vsyncpa [#allocation3], 1 }
0x124b   :  { %2891 = vsyncpa [#allocation3 + $0x1], 1 }
0x124c   :  { %2892 = vsyncpa [#allocation6], 1 }
0x124d   :  { %2894 = vsyncpa [#allocation6 + $0x1], 1 }
0x124e   :  { %2895 = vsyncpa [#allocation9], 1 }
0x124f   :  { %2896 = vsyncpa [#allocation12], 1 }
0x1250   :  { %2897 = vsyncpa [#allocation15], 1 }
0x1251   :  { %2898 = vsyncpa [#allocation18], 1 }
0x1252   :  { %2899 = vsyncpa [#allocation21], 1 }
0x1253   :  { %2900 = vsyncpa [#allocation4], 1 }
0x1254   :  { %2902 = vsyncpa [#allocation4 + $0x1], 1 }
0x1255   :  { %2903 = vsyncpa [#allocation25], 1 }
0x1256   :  { %2905 = vsyncpa [#allocation25 + $0x1], 1 }

</bundles_post_ra>
